<compile_context>
chip_gen: v7x
topology: tpu7x:2x2x1
jax: 0.10.0
libtpu: 0.0.40
codegen_flags: <defaults>
</compile_context>

<pallas_src>
import jax
import jax.numpy as jnp
from jax.experimental import pallas as pl
from jax.experimental.pallas import tpu as pltpu

LANE = 128
G = 16                  # block-diagonal group count (256x256 weights; use 8 on v5e)
TB_MAX = 32768          # batch tile in lanes (pre-grouping); multiple of G*LANE
NEG_SLOPE = 0.01        # F.leaky_relu default negative slope


def _round_up(n, m):
    return ((n + m - 1) // m) * m


def _leaky_relu(z):
    # Valid because 0 < NEG_SLOPE < 1: mul+max instead of cmp+mul+select.
    return jnp.maximum(z, NEG_SLOPE * z)


def mor_nn_kernel(x_ref, u_ref,
                  w1x_ref, w1u_ref, b1_ref,
                  w2_ref, b2_ref, w3_ref, b3_ref, w4_ref, b4_ref,
                  w5_ref, b5_ref,
                  out_ref):
    """Fused 5-layer CtgNn in grouped-transposed form.

    Activations are (features*G, TB/G); group g lives in sublane rows
    [16g:16(g+1)] and only mixes with itself because the weights are
    block-diagonal.  Padded batch columns carry bias-only values that the
    wrapper slices off — never reduce over the lane axis in here.
    """
    # Layer 1 in f32 (inputs are f32; negligible extra cost, better accuracy).
    z = (jnp.dot(w1x_ref[...], x_ref[...], preferred_element_type=jnp.float32)
         + jnp.dot(w1u_ref[...], u_ref[...], preferred_element_type=jnp.float32)
         + b1_ref[...])
    h = _leaky_relu(z).astype(jnp.bfloat16)
    # Layers 2-4: bf16 MXU operands, f32 accumulation, f32 bias/activation math,
    # cast to bf16 exactly once per layer right before the next dot.
    for w_ref, b_ref in ((w2_ref, b2_ref), (w3_ref, b3_ref), (w4_ref, b4_ref)):
        z = jnp.dot(w_ref[...], h, preferred_element_type=jnp.float32) + b_ref[...]
        h = _leaky_relu(z).astype(jnp.bfloat16)
    y = jnp.dot(w5_ref[...], h, preferred_element_type=jnp.float32) + b5_ref[...]
    out_ref[...] = jnp.maximum(y, 0.0)      # F.relu; lane-dense (G, TB/G) store


def _group_lanes(a, b_pad):
    """(B, F) -> grouped transposed (F*G, b_pad//G) f32.

    Row r = g*F + f, lane j holds a[g*(b_pad//G) + j, f] (zero for padded rows).
    """
    B, F = a.shape
    a = jnp.pad(a.astype(jnp.float32), ((0, b_pad - B), (0, 0)))
    return a.reshape(G, b_pad // G, F).transpose(0, 2, 1).reshape(F * G, b_pad // G)


def _block_diag(w, dtype):
    """(out, in) -> (out*G, in*G) block-diagonal with G copies of w."""
    return jnp.kron(jnp.eye(G, dtype=w.dtype), w).astype(dtype)


def init_ctg_params(key, x_rom, u_rom):
    """Kaiming-uniform-style init matching the PyTorch module shapes.

    Weights in native PyTorch orientation (out_features, in_features);
    biases as (out_features, 1) columns.
    """
    d_in = x_rom + u_rom
    h = (x_rom + u_rom + 1) * 2
    dims = [(d_in, h), (h, h), (h, h), (h, h), (h, 1)]
    params = []
    for fan_in, fan_out in dims:
        key, kw, kb = jax.random.split(key, 3)
        w_bound = (6.0 / fan_in) ** 0.5           # kaiming_uniform_ (a=0)
        b_bound = 1.0 / (fan_in ** 0.5)           # default Linear bias init
        w = jax.random.uniform(kw, (fan_out, fan_in), jnp.float32, -w_bound, w_bound)
        b = jax.random.uniform(kb, (fan_out, 1), jnp.float32, -b_bound, b_bound)
        params.append((w, b))
    return params


def mor_nn_forward(x_in, u_in, params):
    """x_in: (B, x_rom) f32, u_in: (B, u_rom) f32 -> (B, 1) f32."""
    B, d_x = x_in.shape
    _, d_u = u_in.shape

    # Batch sits on the lane axis; each tile of tb batch elements is split into G
    # groups of tb//G lanes, so tb must be a multiple of G*LANE.
    tb = min(TB_MAX, _round_up(B, G * LANE))
    b_pad = _round_up(B, tb)
    grid = b_pad // tb
    tbg = tb // G                         # grouped lane width per grid step

    x_g = _group_lanes(x_in, b_pad)       # (d_x*G, b_pad//G) f32
    u_g = _group_lanes(u_in, b_pad)       # (d_u*G, b_pad//G) f32

    (w1, b1), (w2, b2), (w3, b3), (w4, b4), (w5, b5) = params
    flat_params = [
        _block_diag(w1[:, :d_x], jnp.float32),     # layer-1 W split over x / u cols,
        _block_diag(w1[:, d_x:], jnp.float32),     # kept in f32
        jnp.tile(b1, (G, 1)).astype(jnp.float32),
    ]
    for w, b in ((w2, b2), (w3, b3), (w4, b4), (w5, b5)):
        flat_params.append(_block_diag(w, jnp.bfloat16))          # bf16 MXU operand
        flat_params.append(jnp.tile(b, (G, 1)).astype(jnp.float32))

    const_map = lambda i: (0, 0)
    in_specs = [pl.BlockSpec((d_x * G, tbg), lambda i: (0, i)),
                pl.BlockSpec((d_u * G, tbg), lambda i: (0, i))]
    in_specs += [pl.BlockSpec(p.shape, const_map) for p in flat_params]

    out = pl.pallas_call(
        mor_nn_kernel,
        out_shape=jax.ShapeDtypeStruct((G, b_pad // G), jnp.float32),
        grid_spec=pltpu.PrefetchScalarGridSpec(
            num_scalar_prefetch=0,
            grid=(grid,),
            in_specs=in_specs,
            out_specs=pl.BlockSpec((G, tbg), lambda i: (0, i)),
        ),
        compiler_params=pltpu.CompilerParams(
            dimension_semantics=("parallel",),
            vmem_limit_bytes=32 * 1024 * 1024,
        ),
    )(x_g, u_g, *flat_params)

    # out[g, j] is the prediction for batch element g*(b_pad//G) + j, so a plain
    # row-major reshape restores batch order; padded columns are sliced off.
    return out.reshape(b_pad)[:B][:, None]


def mor_nn_reference(x_in, u_in, params):
    """Pure-f32 JAX reference of the same forward pass (for correctness check)."""
    h = jnp.concatenate([x_in, u_in], axis=1).astype(jnp.float32)
    for idx, (w, b) in enumerate(params):
        h = h @ w.T + b.T
        if idx < 4:
            h = jnp.where(h >= 0, h, NEG_SLOPE * h)
        else:
            h = jnp.maximum(h, 0.0)
    return h


if __name__ == "__main__":
    # small shapes consistent with the module:
    #   x_rom = 4, u_rom = 3  ->  CtgNn: 7 -> 16 -> 16 -> 16 -> 16 -> 1
    B, X_ROM, U_ROM = 4, 4, 3

    key = jax.random.PRNGKey(0)
    k_params, k_x, k_u = jax.random.split(key, 3)

    params = init_ctg_params(k_params, X_ROM, U_ROM)
    x_in = jax.random.normal(k_x, (B, X_ROM), jnp.float32)   # treated as x_rom (see TODO above)
    u_in = jax.random.normal(k_u, (B, U_ROM), jnp.float32)

    fwd = jax.jit(mor_nn_forward)          # lets XLA fuse the pad/group/transpose prep
    ctg_pred = fwd(x_in, u_in, params)
    ctg_pred = jax.block_until_ready(ctg_pred)

    ref = mor_nn_reference(x_in, u_in, params)
    assert ctg_pred.shape == (B, 1)
    # layers 2-5 use bf16 matmul operands (f32 accumulation) -> loosened tolerance
    assert jnp.allclose(ctg_pred, ref, atol=5e-2, rtol=5e-2), "mismatch vs JAX reference"

    print("KERNEL_OK")
</pallas_src>

<mosaic_0001>
module attributes {stable_mosaic.version = 11 : i64} {
  func.func @mor_nn_kernel(%arg0: i32, %arg1: memref<64x128xf32, #tpu.memory_space<vmem>>, %arg2: memref<48x128xf32, #tpu.memory_space<vmem>>, %arg3: memref<256x64xf32, #tpu.memory_space<vmem>>, %arg4: memref<256x48xf32, #tpu.memory_space<vmem>>, %arg5: memref<256x1xf32, #tpu.memory_space<vmem>>, %arg6: memref<256x256xbf16, #tpu.memory_space<vmem>>, %arg7: memref<256x1xf32, #tpu.memory_space<vmem>>, %arg8: memref<256x256xbf16, #tpu.memory_space<vmem>>, %arg9: memref<256x1xf32, #tpu.memory_space<vmem>>, %arg10: memref<256x256xbf16, #tpu.memory_space<vmem>>, %arg11: memref<256x1xf32, #tpu.memory_space<vmem>>, %arg12: memref<16x256xbf16, #tpu.memory_space<vmem>>, %arg13: memref<16x1xf32, #tpu.memory_space<vmem>>, %arg14: memref<16x128xf32, #tpu.memory_space<vmem>>) attributes {dimension_semantics = [#tpu.dimension_semantics<parallel>], iteration_bounds = array<i64: 1>, scalar_prefetch = 0 : i64, scratch_operands = 0 : i64, tpu.core_type = #tpu.core_type<tc>, window_params = [{transform_indices = @transform_0, window_bounds = array<i64: 64, 128>}, {transform_indices = @transform_1, window_bounds = array<i64: 48, 128>}, {pipeline_mode = #tpu.pipeline_mode<synchronous>, transform_indices = @transform_2, window_bounds = array<i64: 256, 64>}, {pipeline_mode = #tpu.pipeline_mode<synchronous>, transform_indices = @transform_3, window_bounds = array<i64: 256, 48>}, {pipeline_mode = #tpu.pipeline_mode<synchronous>, transform_indices = @transform_4, window_bounds = array<i64: 256, 1>}, {pipeline_mode = #tpu.pipeline_mode<synchronous>, transform_indices = @transform_5, window_bounds = array<i64: 256, 256>}, {pipeline_mode = #tpu.pipeline_mode<synchronous>, transform_indices = @transform_6, window_bounds = array<i64: 256, 1>}, {pipeline_mode = #tpu.pipeline_mode<synchronous>, transform_indices = @transform_7, window_bounds = array<i64: 256, 256>}, {pipeline_mode = #tpu.pipeline_mode<synchronous>, transform_indices = @transform_8, window_bounds = array<i64: 256, 1>}, {pipeline_mode = #tpu.pipeline_mode<synchronous>, transform_indices = @transform_9, window_bounds = array<i64: 256, 256>}, {pipeline_mode = #tpu.pipeline_mode<synchronous>, transform_indices = @transform_10, window_bounds = array<i64: 256, 1>}, {pipeline_mode = #tpu.pipeline_mode<synchronous>, transform_indices = @transform_11, window_bounds = array<i64: 16, 256>}, {pipeline_mode = #tpu.pipeline_mode<synchronous>, transform_indices = @transform_12, window_bounds = array<i64: 16, 1>}, {transform_indices = @transform_13, window_bounds = array<i64: 16, 128>}]} {
    %c0 = arith.constant 0 : index
    %c0_0 = arith.constant 0 : index
    %0 = vector.load %arg3[%c0, %c0_0] : memref<256x64xf32, #tpu.memory_space<vmem>>, vector<256x64xf32>
    %c0_1 = arith.constant 0 : index
    %c0_2 = arith.constant 0 : index
    %1 = vector.load %arg1[%c0_1, %c0_2] : memref<64x128xf32, #tpu.memory_space<vmem>>, vector<64x128xf32>
    %cst = arith.constant dense<0.000000e+00> : vector<256x128xf32>
    %2 = tpu.matmul %0, %1, %cst {dimension_numbers = #tpu.dot_dimension_numbers<[1], [0], [0], [1], [0, 0, 1, 1], [], []>} : vector<256x64xf32>, vector<64x128xf32>, vector<256x128xf32> -> vector<256x128xf32>
    %c0_3 = arith.constant 0 : index
    %c0_4 = arith.constant 0 : index
    %3 = vector.load %arg4[%c0_3, %c0_4] : memref<256x48xf32, #tpu.memory_space<vmem>>, vector<256x48xf32>
    %c0_5 = arith.constant 0 : index
    %c0_6 = arith.constant 0 : index
    %4 = vector.load %arg2[%c0_5, %c0_6] : memref<48x128xf32, #tpu.memory_space<vmem>>, vector<48x128xf32>
    %cst_7 = arith.constant dense<0.000000e+00> : vector<256x128xf32>
    %5 = tpu.matmul %3, %4, %cst_7 {dimension_numbers = #tpu.dot_dimension_numbers<[1], [0], [0], [1], [0, 0, 1, 1], [], []>} : vector<256x48xf32>, vector<48x128xf32>, vector<256x128xf32> -> vector<256x128xf32>
    %6 = arith.addf %2, %5 : vector<256x128xf32>
    %c0_8 = arith.constant 0 : index
    %c0_9 = arith.constant 0 : index
    %7 = vector.load %arg5[%c0_8, %c0_9] : memref<256x1xf32, #tpu.memory_space<vmem>>, vector<256x1xf32>
    %8 = vector.broadcast %7 : vector<256x1xf32> to vector<256x128xf32>
    %9 = arith.addf %6, %8 : vector<256x128xf32>
    %cst_10 = arith.constant 0.00999999977 : f32
    %10 = vector.broadcast %cst_10 : f32 to vector<256x128xf32>
    %11 = arith.mulf %10, %9 : vector<256x128xf32>
    %12 = arith.maximumf %9, %11 : vector<256x128xf32>
    %13 = arith.truncf %12 : vector<256x128xf32> to vector<256x128xbf16>
    %c0_11 = arith.constant 0 : index
    %c0_12 = arith.constant 0 : index
    %14 = vector.load %arg6[%c0_11, %c0_12] : memref<256x256xbf16, #tpu.memory_space<vmem>>, vector<256x256xbf16>
    %cst_13 = arith.constant dense<0.000000e+00> : vector<256x128xf32>
    %15 = tpu.matmul %14, %13, %cst_13 {dimension_numbers = #tpu.dot_dimension_numbers<[1], [0], [0], [1], [0, 0, 1, 1], [], []>} : vector<256x256xbf16>, vector<256x128xbf16>, vector<256x128xf32> -> vector<256x128xf32>
    %c0_14 = arith.constant 0 : index
    %c0_15 = arith.constant 0 : index
    %16 = vector.load %arg7[%c0_14, %c0_15] : memref<256x1xf32, #tpu.memory_space<vmem>>, vector<256x1xf32>
    %17 = vector.broadcast %16 : vector<256x1xf32> to vector<256x128xf32>
    %18 = arith.addf %15, %17 : vector<256x128xf32>
    %cst_16 = arith.constant 0.00999999977 : f32
    %19 = vector.broadcast %cst_16 : f32 to vector<256x128xf32>
    %20 = arith.mulf %19, %18 : vector<256x128xf32>
    %21 = arith.maximumf %18, %20 : vector<256x128xf32>
    %22 = arith.truncf %21 : vector<256x128xf32> to vector<256x128xbf16>
    %c0_17 = arith.constant 0 : index
    %c0_18 = arith.constant 0 : index
    %23 = vector.load %arg8[%c0_17, %c0_18] : memref<256x256xbf16, #tpu.memory_space<vmem>>, vector<256x256xbf16>
    %cst_19 = arith.constant dense<0.000000e+00> : vector<256x128xf32>
    %24 = tpu.matmul %23, %22, %cst_19 {dimension_numbers = #tpu.dot_dimension_numbers<[1], [0], [0], [1], [0, 0, 1, 1], [], []>} : vector<256x256xbf16>, vector<256x128xbf16>, vector<256x128xf32> -> vector<256x128xf32>
    %c0_20 = arith.constant 0 : index
    %c0_21 = arith.constant 0 : index
    %25 = vector.load %arg9[%c0_20, %c0_21] : memref<256x1xf32, #tpu.memory_space<vmem>>, vector<256x1xf32>
    %26 = vector.broadcast %25 : vector<256x1xf32> to vector<256x128xf32>
    %27 = arith.addf %24, %26 : vector<256x128xf32>
    %cst_22 = arith.constant 0.00999999977 : f32
    %28 = vector.broadcast %cst_22 : f32 to vector<256x128xf32>
    %29 = arith.mulf %28, %27 : vector<256x128xf32>
    %30 = arith.maximumf %27, %29 : vector<256x128xf32>
    %31 = arith.truncf %30 : vector<256x128xf32> to vector<256x128xbf16>
    %c0_23 = arith.constant 0 : index
    %c0_24 = arith.constant 0 : index
    %32 = vector.load %arg10[%c0_23, %c0_24] : memref<256x256xbf16, #tpu.memory_space<vmem>>, vector<256x256xbf16>
    %cst_25 = arith.constant dense<0.000000e+00> : vector<256x128xf32>
    %33 = tpu.matmul %32, %31, %cst_25 {dimension_numbers = #tpu.dot_dimension_numbers<[1], [0], [0], [1], [0, 0, 1, 1], [], []>} : vector<256x256xbf16>, vector<256x128xbf16>, vector<256x128xf32> -> vector<256x128xf32>
    %c0_26 = arith.constant 0 : index
    %c0_27 = arith.constant 0 : index
    %34 = vector.load %arg11[%c0_26, %c0_27] : memref<256x1xf32, #tpu.memory_space<vmem>>, vector<256x1xf32>
    %35 = vector.broadcast %34 : vector<256x1xf32> to vector<256x128xf32>
    %36 = arith.addf %33, %35 : vector<256x128xf32>
    %cst_28 = arith.constant 0.00999999977 : f32
    %37 = vector.broadcast %cst_28 : f32 to vector<256x128xf32>
    %38 = arith.mulf %37, %36 : vector<256x128xf32>
    %39 = arith.maximumf %36, %38 : vector<256x128xf32>
    %40 = arith.truncf %39 : vector<256x128xf32> to vector<256x128xbf16>
    %c0_29 = arith.constant 0 : index
    %c0_30 = arith.constant 0 : index
    %41 = vector.load %arg12[%c0_29, %c0_30] : memref<16x256xbf16, #tpu.memory_space<vmem>>, vector<16x256xbf16>
    %cst_31 = arith.constant dense<0.000000e+00> : vector<16x128xf32>
    %42 = tpu.matmul %41, %40, %cst_31 {dimension_numbers = #tpu.dot_dimension_numbers<[1], [0], [0], [1], [0, 0, 1, 1], [], []>} : vector<16x256xbf16>, vector<256x128xbf16>, vector<16x128xf32> -> vector<16x128xf32>
    %c0_32 = arith.constant 0 : index
    %c0_33 = arith.constant 0 : index
    %43 = vector.load %arg13[%c0_32, %c0_33] : memref<16x1xf32, #tpu.memory_space<vmem>>, vector<16x1xf32>
    %44 = vector.broadcast %43 : vector<16x1xf32> to vector<16x128xf32>
    %45 = arith.addf %42, %44 : vector<16x128xf32>
    %cst_34 = arith.constant 0.000000e+00 : f32
    %46 = vector.broadcast %cst_34 : f32 to vector<16x128xf32>
    %47 = arith.maximumf %45, %46 : vector<16x128xf32>
    %c0_35 = arith.constant 0 : index
    %c0_36 = arith.constant 0 : index
    %48 = vector.load %arg14[%c0_35, %c0_36] : memref<16x128xf32, #tpu.memory_space<vmem>>, vector<16x128xf32>
    tpu.vector_store %arg14[%c0_35, %c0_36], %47 {strides = array<i32>} : memref<16x128xf32, #tpu.memory_space<vmem>>, vector<16x128xf32>,
    return
  }
  func.func @transform_0(%arg0: i32) -> (i32, i32) {
    %c0_i32 = arith.constant 0 : i32
    %c0_i32_0 = arith.constant 0 : i32
    return %c0_i32, %arg0 : i32, i32
  }
  func.func @transform_1(%arg0: i32) -> (i32, i32) {
    %c0_i32 = arith.constant 0 : i32
    %c0_i32_0 = arith.constant 0 : i32
    return %c0_i32, %arg0 : i32, i32
  }
  func.func @transform_2(%arg0: i32) -> (i32, i32) {
    %c0_i32 = arith.constant 0 : i32
    %c0_i32_0 = arith.constant 0 : i32
    %c0_i32_1 = arith.constant 0 : i32
    return %c0_i32, %c0_i32_0 : i32, i32
  }
  func.func @transform_3(%arg0: i32) -> (i32, i32) {
    %c0_i32 = arith.constant 0 : i32
    %c0_i32_0 = arith.constant 0 : i32
    %c0_i32_1 = arith.constant 0 : i32
    return %c0_i32, %c0_i32_0 : i32, i32
  }
  func.func @transform_4(%arg0: i32) -> (i32, i32) {
    %c0_i32 = arith.constant 0 : i32
    %c0_i32_0 = arith.constant 0 : i32
    %c0_i32_1 = arith.constant 0 : i32
    return %c0_i32, %c0_i32_0 : i32, i32
  }
  func.func @transform_5(%arg0: i32) -> (i32, i32) {
    %c0_i32 = arith.constant 0 : i32
    %c0_i32_0 = arith.constant 0 : i32
    %c0_i32_1 = arith.constant 0 : i32
    return %c0_i32, %c0_i32_0 : i32, i32
  }
  func.func @transform_6(%arg0: i32) -> (i32, i32) {
    %c0_i32 = arith.constant 0 : i32
    %c0_i32_0 = arith.constant 0 : i32
    %c0_i32_1 = arith.constant 0 : i32
    return %c0_i32, %c0_i32_0 : i32, i32
  }
  func.func @transform_7(%arg0: i32) -> (i32, i32) {
    %c0_i32 = arith.constant 0 : i32
    %c0_i32_0 = arith.constant 0 : i32
    %c0_i32_1 = arith.constant 0 : i32
    return %c0_i32, %c0_i32_0 : i32, i32
  }
  func.func @transform_8(%arg0: i32) -> (i32, i32) {
    %c0_i32 = arith.constant 0 : i32
    %c0_i32_0 = arith.constant 0 : i32
    %c0_i32_1 = arith.constant 0 : i32
    return %c0_i32, %c0_i32_0 : i32, i32
  }
  func.func @transform_9(%arg0: i32) -> (i32, i32) {
    %c0_i32 = arith.constant 0 : i32
    %c0_i32_0 = arith.constant 0 : i32
    %c0_i32_1 = arith.constant 0 : i32
    return %c0_i32, %c0_i32_0 : i32, i32
  }
  func.func @transform_10(%arg0: i32) -> (i32, i32) {
    %c0_i32 = arith.constant 0 : i32
    %c0_i32_0 = arith.constant 0 : i32
    %c0_i32_1 = arith.constant 0 : i32
    return %c0_i32, %c0_i32_0 : i32, i32
  }
  func.func @transform_11(%arg0: i32) -> (i32, i32) {
    %c0_i32 = arith.constant 0 : i32
    %c0_i32_0 = arith.constant 0 : i32
    %c0_i32_1 = arith.constant 0 : i32
    return %c0_i32, %c0_i32_0 : i32, i32
  }
  func.func @transform_12(%arg0: i32) -> (i32, i32) {
    %c0_i32 = arith.constant 0 : i32
    %c0_i32_0 = arith.constant 0 : i32
    %c0_i32_1 = arith.constant 0 : i32
    return %c0_i32, %c0_i32_0 : i32, i32
  }
  func.func @transform_13(%arg0: i32) -> (i32, i32) {
    %c0_i32 = arith.constant 0 : i32
    %c0_i32_0 = arith.constant 0 : i32
    return %c0_i32, %arg0 : i32, i32
  }
}

</mosaic_0001>

<bundles_post_ra>
// kernel: mor_nn_forward.1
= control target key start
LH: loop header
LB: loop body
LE: loop exit
PB: predicated region body
PF: predicated region fallthrough
CT: control target
= control target key end

     0   :  { %v3951_v0 = vmov 0   ;;  %vm123_vm0 = vcmask 392192   ;;  %vm445_vm1 = vcmask 523264   ;;  %s5346_s4 = inlined_call_operand.vmem [shape: f32[256,1], index: 4, kind: input, shape index: {}]   ;;  %s5347_s1 = inlined_call_operand.vmem [shape: f32[48,128], index: 1, kind: input, shape index: {}]   ;;  %s5348_s3 = inlined_call_operand.vmem [shape: f32[256,48], index: 3, kind: input, shape index: {}]   ;;  %s5349_s0 = inlined_call_operand.vmem [shape: f32[64,128], index: 0, kind: input, shape index: {}]   ;;  %s5350_s6 = inlined_call_operand.vmem [shape: f32[256,1], index: 6, kind: input, shape index: {}]   ;;  %s5351_s2 = inlined_call_operand.vmem [shape: f32[256,64], index: 2, kind: input, shape index: {}]   ;;  %s5352_s8 = inlined_call_operand.vmem [shape: f32[256,1], index: 8, kind: input, shape index: {}]   ;;  %s5353_s10 = inlined_call_operand.vmem [shape: f32[256,1], index: 10, kind: input, shape index: {}]   ;;  %s5354_s5 = inlined_call_operand.vmem [shape: bf16[256,256], index: 5, kind: input, shape index: {}]   ;;  %s5355_s12 = inlined_call_operand.vmem [shape: f32[16,1], index: 12, kind: input, shape index: {}]   ;;  %s5356_s7 = inlined_call_operand.vmem [shape: bf16[256,256], index: 7, kind: input, shape index: {}]   ;;  %s5357_s9 = inlined_call_operand.vmem [shape: bf16[256,256], index: 9, kind: input, shape index: {}]   ;;  %s5358_s11 = inlined_call_operand.vmem [shape: bf16[16,256], index: 11, kind: input, shape index: {}]   ;;  %s5359_s13 = inlined_call_operand.vmem [shape: f32[16,128], index: 13, kind: output, shape index: {}]  }
   0x1   :  { %3803 = vset.pattern.permute.xlu1 %v3951_v0  ;;  %3802 = vset.pattern.permute.xlu0 %v3951_v0  ;;  %v783_v1 = vld [vmem:[%s5346_s4 + $0x80] sm:$0xff]  ;;  %v118_v4 = vld [vmem:[%s5347_s1 + $0x8] sm:$0xff]  ;;  %v119_v7 = vld [vmem:[%s5347_s1 + $0x10] sm:$0xff] }
   0x2   :  { %v767_v2 = vld [vmem:[%s5346_s4] sm:$0xff]  ;;  %881 = vperm.xlu0 %3802, %v783_v1   ;;  %v784_v6 = vld [vmem:[%s5346_s4 + $0x88] sm:$0xff]  ;;  %v120_v8 = vld [vmem:[%s5347_s1 + $0x18] sm:$0xff] }
   0x3   :  { %v117_v3 = vld [vmem:[%s5347_s1] sm:$0xff]  ;;  %801 = vperm.xlu1 %3803, %v767_v2   ;;  %v768_v9 = vld [vmem:[%s5346_s4 + $0x8] sm:$0xff]  ;;  %v3745_v10 = vpack.c.bf16 %v120_v8, %v119_v7  ;;  %v785_v14 = vld [vmem:[%s5346_s4 + $0x90] sm:$0xff] }
   0x4   :  { %v3741_v5 = vpack.c.bf16 %v118_v4, %v117_v3  ;;  %v121_v11 = vld [vmem:[%s5347_s1 + $0x20] sm:$0xff]  ;;  %v122_v12 = vld [vmem:[%s5347_s1 + $0x28] sm:$0xff]  ;;  %v786_v16 = vld [vmem:[%s5346_s4 + $0x98] sm:$0xff] }
   0x5   :  { %v85_v13 = vld [vmem:[%s5348_s3] sm:$0xff]  ;;  %v3749_v15 = vpack.c.bf16 %v122_v12, %v121_v11  ;;  %v769_v17 = vld [vmem:[%s5346_s4 + $0x10] sm:$0xff]  ;;  %v770_v18 = vld [vmem:[%s5346_s4 + $0x18] sm:$0xff] }
   0x6   :  { %3742 = vmatprep.subr.bf16.mxu0 %v3741_v5  ;;  %886 = vperm.xlu0 %3802, %v784_v6   ;;  %v86_v19 = vld [vmem:[%s5348_s3 + $0x8] sm:$0xff]  ;;  %v787_v20 = vld [vmem:[%s5346_s4 + $0xa0] sm:$0xff]  ;;  %v87_v21 = vld [vmem:[%s5348_s3 + $0x10] sm:$0xff] }
   0x7   :  { %3744 = vmatpush3.bf16.msra.mxu0 %v3741_v5  ;;  %806 = vperm.xlu1 %3803, %v768_v9   ;;  %v788_v22 = vld [vmem:[%s5346_s4 + $0xa8] sm:$0xff]  ;;  %v88_v23 = vld [vmem:[%s5348_s3 + $0x18] sm:$0xff]  ;;  %v771_v24 = vld [vmem:[%s5346_s4 + $0x20] sm:$0xff] }
   0x8   :  { %3746 = vmatprep.subr.bf16.mxu0 %v3745_v10  ;;  %3629 = vmatprep.mubr.msk.f32.mxu0 %vm123_vm0, %v85_v13  ;;  %v89_v25 = vld [vmem:[%s5348_s3 + $0x20] sm:$0xff]  ;;  %v772_v26 = vld [vmem:[%s5346_s4 + $0x28] sm:$0xff]  ;;  %v789_v30 = vld [vmem:[%s5346_s4 + $0xb0] sm:$0xff] }
   0x9   :  { %v90_v27 = vld [vmem:[%s5348_s3 + $0x28] sm:$0xff]  ;;  %v77_v28 = vld [vmem:[%s5349_s0] sm:$0xff]  ;;  %v91_v31 = vld [vmem:[%s5348_s3 + $0x30] sm:$0xff] }
   0xa   :  { %891 = vperm.xlu0 %3802, %v785_v14   ;;  %v78_v29 = vld [vmem:[%s5349_s0 + $0x8] sm:$0xff]  ;;  %v790_v33 = vld [vmem:[%s5346_s4 + $0xb8] sm:$0xff]  ;;  %v79_v34 = vld [vmem:[%s5349_s0 + $0x10] sm:$0xff] }
   0xb   :  { %3748 = vmatpush3.bf16.msra.mxu0 %v3745_v10  ;;  %896 = vperm.xlu1 %3803, %v786_v16   ;;  %v3753_v32 = vpack.c.bf16 %v78_v29, %v77_v28  ;;  %v80_v35 = vld [vmem:[%s5349_s0 + $0x18] sm:$0xff]  ;;  %v81_v38 = vld [vmem:[%s5349_s0 + $0x20] sm:$0xff]  ;;  %v82_v39 = vld [vmem:[%s5349_s0 + $0x28] sm:$0xff] }
   0xc   :  { %3750 = vmatprep.subr.bf16.mxu0 %v3749_v15  ;;  %v3757_v36 = vpack.c.bf16 %v80_v35, %v79_v34  ;;  %v92_v37 = vld [vmem:[%s5348_s3 + $0x38] sm:$0xff]  ;;  %v773_v40 = vld [vmem:[%s5346_s4 + $0x30] sm:$0xff]  ;;  %v93_v41 = vld [vmem:[%s5348_s3 + $0x40] sm:$0xff]  ;;  %v3761_v43 = vpack.c.bf16 %v82_v39, %v81_v38 }
   0xd   :  { %v774_v42 = vld [vmem:[%s5346_s4 + $0x38] sm:$0xff]  ;;  %v83_v44 = vld [vmem:[%s5349_s0 + $0x30] sm:$0xff]  ;;  %v94_v46 = vld [vmem:[%s5348_s3 + $0x48] sm:$0xff] }
   0xe   :  { %811 = vperm.xlu0 %3802, %v769_v17   ;;  %v84_v45 = vld [vmem:[%s5349_s0 + $0x38] sm:$0xff]  ;;  %v791_v47 = vld [vmem:[%s5346_s4 + $0xc0] sm:$0xff]  ;;  %v95_v48 = vld [vmem:[%s5348_s3 + $0x50] sm:$0xff] }
   0xf   :  { %3752 = vmatpush3.bf16.msra.mxu0 %v3749_v15  ;;  %816 = vperm.xlu1 %3803, %v770_v18   ;;  %v792_v49 = vld [vmem:[%s5346_s4 + $0xc8] sm:$0xff]  ;;  %v3765_v50 = vpack.c.bf16 %v84_v45, %v83_v44  ;;  %v96_v51 = vld [vmem:[%s5348_s3 + $0x58] sm:$0xff]  ;;  %v775_v52 = vld [vmem:[%s5346_s4 + $0x40] sm:$0xff] }
  0x10   :  { %3754 = vmatprep.subr.bf16.mxu0 %v3753_v32  ;;  %v97_v53 = vld [vmem:[%s5348_s3 + $0x60] sm:$0xff]  ;;  %v776_v54 = vld [vmem:[%s5346_s4 + $0x48] sm:$0xff]  ;;  %v793_v56 = vld [vmem:[%s5346_s4 + $0xd0] sm:$0xff] }
  0x11   :  { %v98_v55 = vld [vmem:[%s5348_s3 + $0x68] sm:$0xff]  ;;  %v99_v57 = vld [vmem:[%s5348_s3 + $0x70] sm:$0xff]  ;;  %v794_v58 = vld [vmem:[%s5346_s4 + $0xd8] sm:$0xff] }
  0x12   :  { %3630 = vmatmul.mubr.msk.f32.vlgmr.msra.gmra.mrb[0].mxu0 %vm123_vm0, %v86_v19  ;;  %901 = vperm.xlu0 %3802, %v787_v20   ;;  %v100_v59 = vld [vmem:[%s5348_s3 + $0x78] sm:$0xff]  ;;  %v777_v60 = vld [vmem:[%s5346_s4 + $0x50] sm:$0xff]  ;;  %v101_v61 = vld [vmem:[%s5348_s3 + $0x80] sm:$0xff] }
  0x13   :  { %3632 = vmatprep.mubr.msk.f32.mxu0 %vm123_vm0, %v87_v21  ;;  %906 = vperm.xlu1 %3803, %v788_v22   ;;  %v778_v62 = vld [vmem:[%s5346_s4 + $0x58] sm:$0xff]  ;;  %v102_v63 = vld [vmem:[%s5348_s3 + $0x88] sm:$0xff]  ;;  %v795_v0 = vld [vmem:[%s5346_s4 + $0xe0] sm:$0xff] }
  0x14   :  { %3756 = vmatpush3.bf16.msra.mxu0 %v3753_v32  ;;  %v103_v1 = vld [vmem:[%s5348_s3 + $0x90] sm:$0xff]  ;;  %v796_v2 = vld [vmem:[%s5346_s4 + $0xe8] sm:$0xff]  ;;  %v104_v3 = vld [vmem:[%s5348_s3 + $0x98] sm:$0xff] }
  0x15   :  { %3758 = vmatprep.subr.bf16.mxu0 %v3757_v36  ;;  %v779_v4 = vld [vmem:[%s5346_s4 + $0x60] sm:$0xff]  ;;  %v780_v6 = vld [vmem:[%s5346_s4 + $0x68] sm:$0xff]  ;;  %v797_v8 = vld [vmem:[%s5346_s4 + $0xf0] sm:$0xff] }
  0x16   :  { %3633 = vmatmul.mubr.msk.f32.gmra.mrb[2].mxu0 %vm123_vm0, %v88_v23  ;;  %821 = vperm.xlu0 %3802, %v771_v24   ;;  %v105_v5 = vld [vmem:[%s5348_s3 + $0xa0] sm:$0xff]  ;;  %v106_v7 = vld [vmem:[%s5348_s3 + $0xa8] sm:$0xff]  ;;  %v107_v9 = vld [vmem:[%s5348_s3 + $0xb0] sm:$0xff] }
  0x17   :  { %3635 = vmatprep.mubr.msk.f32.mxu0 %vm123_vm0, %v89_v25  ;;  %826 = vperm.xlu1 %3803, %v772_v26   ;;  %v798_v10 = vld [vmem:[%s5346_s4 + $0xf8] sm:$0xff]  ;;  %v781_v12 = vld [vmem:[%s5346_s4 + $0x70] sm:$0xff]  ;;  %v109_v13 = vld [vmem:[%s5348_s3 + $0xc0] sm:$0xff] }
  0x18   :  { %3760 = vmatpush3.bf16.msra.mxu0 %v3757_v36  ;;  %v108_v11 = vld [vmem:[%s5348_s3 + $0xb8] sm:$0xff]  ;;  %v110_v15 = vld [vmem:[%s5348_s3 + $0xc8] sm:$0xff]  ;;  %v1119_v16 = vld [vmem:[%s5350_s6 + $0x80] sm:$0xff] }
  0x19   :  { %3762 = vmatprep.subr.bf16.mxu0 %v3761_v43  ;;  %v782_v14 = vld [vmem:[%s5346_s4 + $0x78] sm:$0xff]  ;;  %v111_v17 = vld [vmem:[%s5348_s3 + $0xd0] sm:$0xff]  ;;  %v1120_v18 = vld [vmem:[%s5350_s6 + $0x88] sm:$0xff] }
  0x1a   :  { %3636 = vmatmul.mubr.msk.f32.gmra.mrb[4].mxu0 %vm123_vm0, %v90_v27  ;;  %911 = vperm.xlu0 %3802, %v789_v30   ;;  %v112_v19 = vld [vmem:[%s5348_s3 + $0xd8] sm:$0xff]  ;;  %v1103_v20 = vld [vmem:[%s5350_s6] sm:$0xff]  ;;  %v1104_v22 = vld [vmem:[%s5350_s6 + $0x8] sm:$0xff] }
  0x1b   :  { %3638 = vmatprep.mubr.msk.f32.mxu0 %vm123_vm0, %v91_v31  ;;  %916 = vperm.xlu1 %3803, %v790_v33   ;;  %v113_v21 = vld [vmem:[%s5348_s3 + $0xe0] sm:$0xff]  ;;  %v114_v23 = vld [vmem:[%s5348_s3 + $0xe8] sm:$0xff]  ;;  %v1121_v24 = vld [vmem:[%s5350_s6 + $0x90] sm:$0xff] }
  0x1c   :  { %3764 = vmatpush3.bf16.msra.mxu0 %v3761_v43  ;;  %v115_v25 = vld [vmem:[%s5348_s3 + $0xf0] sm:$0xff]  ;;  %v1122_v26 = vld [vmem:[%s5350_s6 + $0x98] sm:$0xff]  ;;  %v45_v29 = vld [vmem:[%s5351_s2] sm:$0xff] }
  0x1d   :  { %3766 = vmatprep.subr.bf16.mxu0 %v3765_v50  ;;  %v116_v27 = vld [vmem:[%s5348_s3 + $0xf8] sm:$0xff]  ;;  %v1105_v28 = vld [vmem:[%s5350_s6 + $0x10] sm:$0xff]  ;;  %v46_v31 = vld [vmem:[%s5351_s2 + $0x8] sm:$0xff] }
  0x1e   :  { %3639 = vmatmul.mubr.msk.f32.gmra.mrb[6].mxu0 %vm123_vm0, %v92_v37  ;;  %831 = vperm.xlu0 %3802, %v773_v40   ;;  %v1106_v30 = vld [vmem:[%s5350_s6 + $0x18] sm:$0xff]  ;;  %v1123_v32 = vld [vmem:[%s5350_s6 + $0xa0] sm:$0xff]  ;;  %v47_v33 = vld [vmem:[%s5351_s2 + $0x10] sm:$0xff] }
  0x1f   :  { %3641 = vmatprep.mubr.msk.f32.mxu0 %vm123_vm0, %v93_v41  ;;  %836 = vperm.xlu1 %3803, %v774_v42   ;;  %v1124_v34 = vld [vmem:[%s5350_s6 + $0xa8] sm:$0xff]  ;;  %v48_v35 = vld [vmem:[%s5351_s2 + $0x18] sm:$0xff]  ;;  %v1107_v36 = vld [vmem:[%s5350_s6 + $0x20] sm:$0xff] }
  0x20   :  { %3768 = vmatpush3.bf16.msra.mxu0 %v3765_v50  ;;  %v49_v37 = vld [vmem:[%s5351_s2 + $0x20] sm:$0xff]  ;;  %v1108_v38 = vld [vmem:[%s5350_s6 + $0x28] sm:$0xff]  ;;  %v1125_v40 = vld [vmem:[%s5350_s6 + $0xb0] sm:$0xff] }
  0x21   :  { %v50_v39 = vld [vmem:[%s5351_s2 + $0x28] sm:$0xff]  ;;  %v51_v41 = vld [vmem:[%s5351_s2 + $0x30] sm:$0xff]  ;;  %v1126_v42 = vld [vmem:[%s5350_s6 + $0xb8] sm:$0xff] }
  0x22   :  { %3642 = vmatmul.mubr.msk.f32.gmra.mrb[8].mxu0 %vm123_vm0, %v94_v46  ;;  %921 = vperm.xlu0 %3802, %v791_v47   ;;  %v52_v43 = vld [vmem:[%s5351_s2 + $0x38] sm:$0xff]  ;;  %v1109_v44 = vld [vmem:[%s5350_s6 + $0x30] sm:$0xff]  ;;  %v53_v45 = vld [vmem:[%s5351_s2 + $0x40] sm:$0xff] }
  0x23   :  { %3644 = vmatprep.mubr.msk.f32.mxu0 %vm123_vm0, %v95_v48  ;;  %926 = vperm.xlu1 %3803, %v792_v49   ;;  %v1110_v46 = vld [vmem:[%s5350_s6 + $0x38] sm:$0xff]  ;;  %v54_v47 = vld [vmem:[%s5351_s2 + $0x48] sm:$0xff]  ;;  %v1127_v48 = vld [vmem:[%s5350_s6 + $0xc0] sm:$0xff] }
  0x24   :  { %v55_v49 = vld [vmem:[%s5351_s2 + $0x50] sm:$0xff]  ;;  %v1128_v50 = vld [vmem:[%s5350_s6 + $0xc8] sm:$0xff] }
  0x26   :  { %3645 = vmatmul.mubr.msk.f32.gmra.mrb[10].mxu0 %vm123_vm0, %v96_v51  ;;  %841 = vperm.xlu0 %3802, %v775_v52   ;;  %v56_v51 = vld [vmem:[%s5351_s2 + $0x58] sm:$0xff]  ;;  %v1111_v52 = vld [vmem:[%s5350_s6 + $0x40] sm:$0xff] }
  0x27   :  { %3647 = vmatprep.mubr.msk.f32.mxu0 %vm123_vm0, %v97_v53  ;;  %846 = vperm.xlu1 %3803, %v776_v54   ;;  %v57_v53 = vld [vmem:[%s5351_s2 + $0x60] sm:$0xff]  ;;  %v1112_v54 = vld [vmem:[%s5350_s6 + $0x48] sm:$0xff] }
  0x2a   :  { %3648 = vmatmul.mubr.msk.f32.gmra.mrb[12].mxu0 %vm123_vm0, %v98_v55  ;;  %931 = vperm.xlu0 %3802, %v793_v56   ;;  %v58_v55 = vld [vmem:[%s5351_s2 + $0x68] sm:$0xff]  ;;  %v1129_v56 = vld [vmem:[%s5350_s6 + $0xd0] sm:$0xff] }
  0x2b   :  { %3650 = vmatprep.mubr.msk.f32.mxu0 %vm123_vm0, %v99_v57  ;;  %936 = vperm.xlu1 %3803, %v794_v58   ;;  %v59_v57 = vld [vmem:[%s5351_s2 + $0x70] sm:$0xff]  ;;  %v1130_v58 = vld [vmem:[%s5350_s6 + $0xd8] sm:$0xff] }
  0x2e   :  { %3651 = vmatmul.mubr.msk.f32.gmra.mrb[14].mxu0 %vm123_vm0, %v100_v59  ;;  %851 = vperm.xlu0 %3802, %v777_v60   ;;  %v60_v59 = vld [vmem:[%s5351_s2 + $0x78] sm:$0xff]  ;;  %v1113_v60 = vld [vmem:[%s5350_s6 + $0x50] sm:$0xff] }
  0x2f   :  { %3653 = vmatprep.mubr.msk.f32.mxu0 %vm123_vm0, %v101_v61  ;;  %856 = vperm.xlu1 %3803, %v778_v62   ;;  %v61_v61 = vld [vmem:[%s5351_s2 + $0x80] sm:$0xff]  ;;  %v1114_v62 = vld [vmem:[%s5350_s6 + $0x58] sm:$0xff] }
  0x32   :  { %3654 = vmatmul.mubr.msk.f32.gmra.mrb[16].mxu0 %vm123_vm0, %v102_v63  ;;  %941 = vperm.xlu0 %3802, %v795_v0   ;;  %v62_v63 = vld [vmem:[%s5351_s2 + $0x88] sm:$0xff]  ;;  %v1131_v0 = vld [vmem:[%s5350_s6 + $0xe0] sm:$0xff] }
  0x33   :  { %3656 = vmatprep.mubr.msk.f32.mxu0 %vm123_vm0, %v103_v1  ;;  %946 = vperm.xlu1 %3803, %v796_v2   ;;  %v63_v1 = vld [vmem:[%s5351_s2 + $0x90] sm:$0xff]  ;;  %v1132_v2 = vld [vmem:[%s5350_s6 + $0xe8] sm:$0xff] }
  0x36   :  { %3657 = vmatmul.mubr.msk.f32.gmra.mrb[18].mxu0 %vm123_vm0, %v104_v3  ;;  %861 = vperm.xlu0 %3802, %v779_v4   ;;  %v64_v3 = vld [vmem:[%s5351_s2 + $0x98] sm:$0xff]  ;;  %v1115_v4 = vld [vmem:[%s5350_s6 + $0x60] sm:$0xff] }
  0x37   :  { %3659 = vmatprep.mubr.msk.f32.mxu0 %vm123_vm0, %v105_v5  ;;  %866 = vperm.xlu1 %3803, %v780_v6   ;;  %v65_v5 = vld [vmem:[%s5351_s2 + $0xa0] sm:$0xff]  ;;  %v1116_v6 = vld [vmem:[%s5350_s6 + $0x68] sm:$0xff] }
  0x3a   :  { %3660 = vmatmul.mubr.msk.f32.gmra.mrb[20].mxu0 %vm123_vm0, %v106_v7  ;;  %951 = vperm.xlu0 %3802, %v797_v8   ;;  %v66_v7 = vld [vmem:[%s5351_s2 + $0xa8] sm:$0xff]  ;;  %v1133_v8 = vld [vmem:[%s5350_s6 + $0xf0] sm:$0xff] }
  0x3b   :  { %3662 = vmatprep.mubr.msk.f32.mxu0 %vm123_vm0, %v107_v9  ;;  %956 = vperm.xlu1 %3803, %v798_v10   ;;  %v67_v9 = vld [vmem:[%s5351_s2 + $0xb0] sm:$0xff]  ;;  %v1134_v10 = vld [vmem:[%s5350_s6 + $0xf8] sm:$0xff] }
  0x3e   :  { %3663 = vmatmul.mubr.msk.f32.gmra.mrb[22].mxu0 %vm123_vm0, %v108_v11  ;;  %871 = vperm.xlu0 %3802, %v781_v12   ;;  %v68_v11 = vld [vmem:[%s5351_s2 + $0xb8] sm:$0xff]  ;;  %v1117_v12 = vld [vmem:[%s5350_s6 + $0x70] sm:$0xff] }
  0x3f   :  { %3665 = vmatprep.mubr.msk.f32.mxu0 %vm123_vm0, %v109_v13  ;;  %876 = vperm.xlu1 %3803, %v782_v14   ;;  %v69_v13 = vld [vmem:[%s5351_s2 + $0xc0] sm:$0xff]  ;;  %v1118_v14 = vld [vmem:[%s5350_s6 + $0x78] sm:$0xff] }
  0x42   :  { %3666 = vmatmul.mubr.msk.f32.gmra.mrb[24].mxu0 %vm123_vm0, %v110_v15  ;;  %1217 = vperm.xlu0 %3802, %v1119_v16   ;;  %v70_v15 = vld [vmem:[%s5351_s2 + $0xc8] sm:$0xff]  ;;  %v1744_v16 = vld [vmem:[%s5352_s8 + $0x80] sm:$0xff] }
  0x43   :  { %3668 = vmatprep.mubr.msk.f32.mxu0 %vm123_vm0, %v111_v17  ;;  %1222 = vperm.xlu1 %3803, %v1120_v18   ;;  %v71_v17 = vld [vmem:[%s5351_s2 + $0xd0] sm:$0xff]  ;;  %v1745_v18 = vld [vmem:[%s5352_s8 + $0x88] sm:$0xff] }
  0x46   :  { %3669 = vmatmul.mubr.msk.f32.gmra.mrb[26].mxu0 %vm123_vm0, %v112_v19  ;;  %1137 = vperm.xlu0 %3802, %v1103_v20   ;;  %v72_v19 = vld [vmem:[%s5351_s2 + $0xd8] sm:$0xff]  ;;  %v1728_v20 = vld [vmem:[%s5352_s8] sm:$0xff] }
  0x47   :  { %3671 = vmatprep.mubr.msk.f32.mxu0 %vm123_vm0, %v113_v21  ;;  %1142 = vperm.xlu1 %3803, %v1104_v22   ;;  %v73_v21 = vld [vmem:[%s5351_s2 + $0xe0] sm:$0xff]  ;;  %v1729_v22 = vld [vmem:[%s5352_s8 + $0x8] sm:$0xff] }
  0x4a   :  { %3672 = vmatmul.mubr.msk.f32.gmra.mrb[28].mxu0 %vm123_vm0, %v114_v23  ;;  %1227 = vperm.xlu0 %3802, %v1121_v24   ;;  %v74_v23 = vld [vmem:[%s5351_s2 + $0xe8] sm:$0xff]  ;;  %v1746_v24 = vld [vmem:[%s5352_s8 + $0x90] sm:$0xff] }
  0x4b   :  { %3674 = vmatprep.mubr.msk.f32.mxu0 %vm123_vm0, %v115_v25  ;;  %1232 = vperm.xlu1 %3803, %v1122_v26   ;;  %v75_v25 = vld [vmem:[%s5351_s2 + $0xf0] sm:$0xff]  ;;  %v1747_v26 = vld [vmem:[%s5352_s8 + $0x98] sm:$0xff] }
  0x4e   :  { %3675 = vmatmul.mubr.msk.f32.gmra.mrb[30].mxu0 %vm123_vm0, %v116_v27  ;;  %1147 = vperm.xlu0 %3802, %v1105_v28   ;;  %v76_v27 = vld [vmem:[%s5351_s2 + $0xf8] sm:$0xff]  ;;  %v1730_v28 = vld [vmem:[%s5352_s8 + $0x10] sm:$0xff] }
  0x4f   :  { %3693 = vmatprep.mubr.msk.f32.mxu0 %vm445_vm1, %v45_v29  ;;  %1152 = vperm.xlu1 %3803, %v1106_v30   ;;  %v1731_v29 = vld [vmem:[%s5352_s8 + $0x18] sm:$0xff]  ;;  %v1748_v30 = vld [vmem:[%s5352_s8 + $0xa0] sm:$0xff] }
  0x52   :  { %3694 = vmatmul.mubr.msk.f32.vlgmr.msra.gmra.mrb[0].mxu0 %vm445_vm1, %v46_v31  ;;  %1237 = vperm.xlu0 %3802, %v1123_v32   ;;  %v1749_v31 = vld [vmem:[%s5352_s8 + $0xa8] sm:$0xff]  ;;  %v1732_v32 = vld [vmem:[%s5352_s8 + $0x20] sm:$0xff] }
  0x53   :  { %3696 = vmatprep.mubr.msk.f32.mxu0 %vm445_vm1, %v47_v33  ;;  %1242 = vperm.xlu1 %3803, %v1124_v34   ;;  %v1733_v33 = vld [vmem:[%s5352_s8 + $0x28] sm:$0xff]  ;;  %v1750_v34 = vld [vmem:[%s5352_s8 + $0xb0] sm:$0xff] }
  0x56   :  { %3697 = vmatmul.mubr.msk.f32.gmra.mrb[2].mxu0 %vm445_vm1, %v48_v35  ;;  %1157 = vperm.xlu0 %3802, %v1107_v36   ;;  %v1751_v35 = vld [vmem:[%s5352_s8 + $0xb8] sm:$0xff]  ;;  %v1734_v36 = vld [vmem:[%s5352_s8 + $0x30] sm:$0xff] }
  0x57   :  { %3699 = vmatprep.mubr.msk.f32.mxu0 %vm445_vm1, %v49_v37  ;;  %1162 = vperm.xlu1 %3803, %v1108_v38   ;;  %v1735_v37 = vld [vmem:[%s5352_s8 + $0x38] sm:$0xff]  ;;  %v1752_v38 = vld [vmem:[%s5352_s8 + $0xc0] sm:$0xff] }
  0x5a   :  { %3700 = vmatmul.mubr.msk.f32.gmra.mrb[4].mxu0 %vm445_vm1, %v50_v39  ;;  %1247 = vperm.xlu0 %3802, %v1125_v40   ;;  %v1753_v39 = vld [vmem:[%s5352_s8 + $0xc8] sm:$0xff]  ;;  %v1736_v40 = vld [vmem:[%s5352_s8 + $0x40] sm:$0xff] }
  0x5b   :  { %3702 = vmatprep.mubr.msk.f32.mxu0 %vm445_vm1, %v51_v41  ;;  %1252 = vperm.xlu1 %3803, %v1126_v42   ;;  %v1737_v41 = vld [vmem:[%s5352_s8 + $0x48] sm:$0xff]  ;;  %v1754_v42 = vld [vmem:[%s5352_s8 + $0xd0] sm:$0xff] }
  0x5e   :  { %3703 = vmatmul.mubr.msk.f32.gmra.mrb[6].mxu0 %vm445_vm1, %v52_v43  ;;  %1167 = vperm.xlu0 %3802, %v1109_v44   ;;  %v1755_v44 = vld [vmem:[%s5352_s8 + $0xd8] sm:$0xff] }
  0x5f   :  { %3705 = vmatprep.mubr.msk.f32.mxu0 %vm445_vm1, %v53_v45  ;;  %1172 = vperm.xlu1 %3803, %v1110_v46   ;;  %v1738_v46 = vld [vmem:[%s5352_s8 + $0x50] sm:$0xff] }
  0x62   :  { %3706 = vmatmul.mubr.msk.f32.gmra.mrb[8].mxu0 %vm445_vm1, %v54_v47  ;;  %1257 = vperm.xlu0 %3802, %v1127_v48   ;;  %v1739_v47 = vld [vmem:[%s5352_s8 + $0x58] sm:$0xff] }
  0x63   :  { %3708 = vmatprep.mubr.msk.f32.mxu0 %vm445_vm1, %v55_v49  ;;  %1262 = vperm.xlu1 %3803, %v1128_v50   ;;  %v1756_v50 = vld [vmem:[%s5352_s8 + $0xe0] sm:$0xff] }
  0x66   :  { %3709 = vmatmul.mubr.msk.f32.gmra.mrb[10].mxu0 %vm445_vm1, %v56_v51  ;;  %1177 = vperm.xlu0 %3802, %v1111_v52   ;;  %v1757_v51 = vld [vmem:[%s5352_s8 + $0xe8] sm:$0xff]  ;;  %v1740_v52 = vld [vmem:[%s5352_s8 + $0x60] sm:$0xff] }
  0x67   :  { %3711 = vmatprep.mubr.msk.f32.mxu0 %vm445_vm1, %v57_v53  ;;  %1182 = vperm.xlu1 %3803, %v1112_v54   ;;  %v1741_v54 = vld [vmem:[%s5352_s8 + $0x68] sm:$0xff] }
  0x6a   :  { %3712 = vmatmul.mubr.msk.f32.gmra.mrb[12].mxu0 %vm445_vm1, %v58_v55  ;;  %1267 = vperm.xlu0 %3802, %v1129_v56   ;;  %v1758_v56 = vld [vmem:[%s5352_s8 + $0xf0] sm:$0xff] }
  0x6b   :  { %3714 = vmatprep.mubr.msk.f32.mxu0 %vm445_vm1, %v59_v57  ;;  %1272 = vperm.xlu1 %3803, %v1130_v58   ;;  %v1759_v57 = vld [vmem:[%s5352_s8 + $0xf8] sm:$0xff] }
  0x6e   :  { %3715 = vmatmul.mubr.msk.f32.gmra.mrb[14].mxu0 %vm445_vm1, %v60_v59  ;;  %1187 = vperm.xlu0 %3802, %v1113_v60   ;;  %v1742_v60 = vld [vmem:[%s5352_s8 + $0x70] sm:$0xff] }
  0x6f   :  { %3717 = vmatprep.mubr.msk.f32.mxu0 %vm445_vm1, %v61_v61  ;;  %1192 = vperm.xlu1 %3803, %v1114_v62   ;;  %v1743_v61 = vld [vmem:[%s5352_s8 + $0x78] sm:$0xff]  ;;  %v2369_v62 = vld [vmem:[%s5353_s10 + $0x80] sm:$0xff] }
  0x72   :  { %3718 = vmatmul.mubr.msk.f32.gmra.mrb[16].mxu0 %vm445_vm1, %v62_v63  ;;  %1277 = vperm.xlu0 %3802, %v1131_v0   ;;  %v2370_v0 = vld [vmem:[%s5353_s10 + $0x88] sm:$0xff] }
  0x73   :  { %3720 = vmatprep.mubr.msk.f32.mxu0 %vm445_vm1, %v63_v1  ;;  %1282 = vperm.xlu1 %3803, %v1132_v2   ;;  %v2353_v2 = vld [vmem:[%s5353_s10] sm:$0xff] }
  0x76   :  { %3721 = vmatmul.mubr.msk.f32.gmra.mrb[18].mxu0 %vm445_vm1, %v64_v3  ;;  %1197 = vperm.xlu0 %3802, %v1115_v4   ;;  %v2354_v3 = vld [vmem:[%s5353_s10 + $0x8] sm:$0xff] }
  0x77   :  { %3723 = vmatprep.mubr.msk.f32.mxu0 %vm445_vm1, %v65_v5  ;;  %1202 = vperm.xlu1 %3803, %v1116_v6   ;;  %v2371_v6 = vld [vmem:[%s5353_s10 + $0x90] sm:$0xff] }
  0x7a   :  { %3724 = vmatmul.mubr.msk.f32.gmra.mrb[20].mxu0 %vm445_vm1, %v66_v7  ;;  %1287 = vperm.xlu0 %3802, %v1133_v8   ;;  %v2372_v7 = vld [vmem:[%s5353_s10 + $0x98] sm:$0xff]  ;;  %v2355_v8 = vld [vmem:[%s5353_s10 + $0x10] sm:$0xff] }
  0x7b   :  { %3726 = vmatprep.mubr.msk.f32.mxu0 %vm445_vm1, %v67_v9  ;;  %1292 = vperm.xlu1 %3803, %v1134_v10   ;;  %v2356_v10 = vld [vmem:[%s5353_s10 + $0x18] sm:$0xff] }
  0x7e   :  { %3727 = vmatmul.mubr.msk.f32.gmra.mrb[22].mxu0 %vm445_vm1, %v68_v11  ;;  %1207 = vperm.xlu0 %3802, %v1117_v12   ;;  %v2373_v12 = vld [vmem:[%s5353_s10 + $0xa0] sm:$0xff] }
  0x7f   :  { %3729 = vmatprep.mubr.msk.f32.mxu0 %vm445_vm1, %v69_v13  ;;  %1212 = vperm.xlu1 %3803, %v1118_v14   ;;  %v2374_v13 = vld [vmem:[%s5353_s10 + $0xa8] sm:$0xff] }
  0x81   :  { %v4575_v43 = vpop.permute.xlu0 %881 }
  0x82   :  { %3730 = vmatmul.mubr.msk.f32.gmra.mrb[24].mxu0 %vm445_vm1, %v70_v15  ;;  %1842 = vperm.xlu0 %3802, %v1744_v16   ;;  %v4580_v45 = vpop.permute.xlu1 %801  ;;  %v2357_v16 = vld [vmem:[%s5353_s10 + $0x20] sm:$0xff] }
  0x83   :  { %3732 = vmatprep.mubr.msk.f32.mxu0 %vm445_vm1, %v71_v17  ;;  %1847 = vperm.xlu1 %3803, %v1745_v18   ;;  %v2358_v17 = vld [vmem:[%s5353_s10 + $0x28] sm:$0xff]  ;;  %v2375_v18 = vld [vmem:[%s5353_s10 + $0xb0] sm:$0xff] }
  0x85   :  { %v4588_v48 = vpop.permute.xlu0 %886 }
  0x86   :  { %3733 = vmatmul.mubr.msk.f32.gmra.mrb[26].mxu0 %vm445_vm1, %v72_v19  ;;  %1762 = vperm.xlu0 %3802, %v1728_v20   ;;  %v4590_v49 = vpop.permute.xlu1 %806  ;;  %v2376_v20 = vld [vmem:[%s5353_s10 + $0xb8] sm:$0xff] }
  0x87   :  { %3735 = vmatprep.mubr.msk.f32.mxu0 %vm445_vm1, %v73_v21  ;;  %1767 = vperm.xlu1 %3803, %v1729_v22   ;;  %v2359_v22 = vld [vmem:[%s5353_s10 + $0x30] sm:$0xff] }
  0x89   :  { %v4601_v53 = vpop.permute.xlu0 %891 }
  0x8a   :  { %3736 = vmatmul.mubr.msk.f32.gmra.mrb[28].mxu0 %vm445_vm1, %v74_v23  ;;  %1852 = vperm.xlu0 %3802, %v1746_v24   ;;  %v4606_v55 = vpop.permute.xlu1 %896  ;;  %v2360_v23 = vld [vmem:[%s5353_s10 + $0x38] sm:$0xff] }
  0x8b   :  { %3738 = vmatprep.mubr.msk.f32.mxu0 %vm445_vm1, %v75_v25  ;;  %1857 = vperm.xlu1 %3803, %v1747_v26   ;;  %v2377_v26 = vld [vmem:[%s5353_s10 + $0xc0] sm:$0xff] }
  0x8d   :  { %v4614_v58 = vpop.permute.xlu0 %811 }
  0x8e   :  { %3739 = vmatmul.mubr.msk.f32.gmra.mrb[30].mxu0 %vm445_vm1, %v76_v27  ;;  %1772 = vperm.xlu0 %3802, %v1730_v28   ;;  %v4616_v59 = vpop.permute.xlu1 %816  ;;  %v2378_v27 = vld [vmem:[%s5353_s10 + $0xc8] sm:$0xff]  ;;  %v2361_v28 = vld [vmem:[%s5353_s10 + $0x40] sm:$0xff] }
  0x8f   :  { %1777 = vperm.xlu1 %3803, %v1731_v29  }
  0x91   :  { %v4627_v63 = vpop.permute.xlu0 %901 }
  0x92   :  { %1862 = vperm.xlu0 %3802, %v1748_v30   ;;  %v4632_v1 = vpop.permute.xlu1 %906  ;;  %v2362_v30 = vld [vmem:[%s5353_s10 + $0x48] sm:$0xff] }
  0x93   :  { %1867 = vperm.xlu1 %3803, %v1749_v31  }
  0x95   :  { %v4640_v4 = vpop.permute.xlu0 %821 }
  0x96   :  { %1782 = vperm.xlu0 %3802, %v1732_v32   ;;  %v4642_v5 = vpop.permute.xlu1 %826  ;;  %v2379_v32 = vld [vmem:[%s5353_s10 + $0xd0] sm:$0xff] }
  0x97   :  { %1787 = vperm.xlu1 %3803, %v1733_v33   ;;  %v2380_v33 = vld [vmem:[%s5353_s10 + $0xd8] sm:$0xff] }
  0x99   :  { %v4653_v9 = vpop.permute.xlu0 %911 }
  0x9a   :  { %1872 = vperm.xlu0 %3802, %v1750_v34   ;;  %v4658_v11 = vpop.permute.xlu1 %916 }
  0x9b   :  { %1877 = vperm.xlu1 %3803, %v1751_v35   ;;  %v2363_v35 = vld [vmem:[%s5353_s10 + $0x50] sm:$0xff] }
  0x9d   :  { %v4666_v14 = vpop.permute.xlu0 %831 }
  0x9e   :  { %1792 = vperm.xlu0 %3802, %v1734_v36   ;;  %v4668_v15 = vpop.permute.xlu1 %836 }
  0x9f   :  { %1797 = vperm.xlu1 %3803, %v1735_v37   ;;  %v2364_v37 = vld [vmem:[%s5353_s10 + $0x58] sm:$0xff] }
  0xa1   :  { %v4679_v19 = vpop.permute.xlu0 %921 }
  0xa2   :  { %1882 = vperm.xlu0 %3802, %v1752_v38   ;;  %v4684_v21 = vpop.permute.xlu1 %926  ;;  %v3806_v38 = vld [vmem:[%s5354_s5 + $0x4] ss:$8 sps:$4 sm:$0xff]  }
  0xa3   :  { %1887 = vperm.xlu1 %3803, %v1753_v39   ;;  %v2381_v39 = vld [vmem:[%s5353_s10 + $0xe0] sm:$0xff]  ;;  %1487 = vmatprep.mubr.bf16.mxu1 %v3806_v38 }
  0xa5   :  { %v4692_v24 = vpop.permute.xlu0 %841 }
  0xa6   :  { %1802 = vperm.xlu0 %3802, %v1736_v40   ;;  %v4694_v25 = vpop.permute.xlu1 %846  ;;  %v2382_v40 = vld [vmem:[%s5353_s10 + $0xe8] sm:$0xff] }
  0xa7   :  { %1807 = vperm.xlu1 %3803, %v1737_v41  }
  0xa9   :  { %v4705_v29 = vpop.permute.xlu0 %931 }
  0xaa   :  { %1892 = vperm.xlu0 %3802, %v1754_v42   ;;  %v4710_v31 = vpop.permute.xlu1 %936 }
  0xab   :  { %1897 = vperm.xlu1 %3803, %v1755_v44   ;;  %v2365_v44 = vld [vmem:[%s5353_s10 + $0x60] sm:$0xff] }
  0xad   :  { %v4718_v34 = vpop.permute.xlu0 %851 }
  0xae   :  { %1812 = vperm.xlu0 %3802, %v1738_v46   ;;  %v4723_v36 = vpop.permute.xlu1 %856  ;;  %v2366_v46 = vld [vmem:[%s5353_s10 + $0x68] sm:$0xff] }
  0xaf   :  { %1817 = vperm.xlu1 %3803, %v1739_v47  }
  0xb1   :  { %v4737_v41 = vpop.permute.xlu0 %941 }
  0xb2   :  { %1902 = vperm.xlu0 %3802, %v1756_v50   ;;  %v4739_v42 = vpop.permute.xlu1 %946 }
  0xb3   :  { %1907 = vperm.xlu1 %3803, %v1757_v51   ;;  %v2383_v51 = vld [vmem:[%s5353_s10 + $0xf0] sm:$0xff] }
  0xb5   :  { %v4747_v47 = vpop.permute.xlu0 %861 }
  0xb6   :  { %1822 = vperm.xlu0 %3802, %v1740_v52   ;;  %v4749_v50 = vpop.permute.xlu1 %866  ;;  %v2384_v52 = vld [vmem:[%s5353_s10 + $0xf8] sm:$0xff] }
  0xb7   :  { %1827 = vperm.xlu1 %3803, %v1741_v54   ;;  %v2367_v54 = vld [vmem:[%s5353_s10 + $0x70] sm:$0xff] }
  0xba   :  { %1912 = vperm.xlu0 %3802, %v1758_v56   ;;  %v4760_v56 = vpop.permute.xlu0 %951 }
  0xbb   :  { %1917 = vperm.xlu1 %3803, %v1759_v57   ;;  %v2368_v57 = vld [vmem:[%s5353_s10 + $0x78] sm:$0xff] }
  0xbe   :  { %1832 = vperm.xlu0 %3802, %v1742_v60   ;;  %v4765_v60 = vpop.permute.xlu1 %956 }
  0xbf   :  { %1837 = vperm.xlu1 %3803, %v1743_v61   ;;  %v2948_v61 = vld [vmem:[%s5355_s12] sm:$0xff] }
  0xc2   :  { %2467 = vperm.xlu0 %3802, %v2369_v62   ;;  %v2949_v62 = vld [vmem:[%s5355_s12 + $0x8] sm:$0xff] }
  0xc3   :  { %2472 = vperm.xlu1 %3803, %v2370_v0   ;;  %v4773_v0 = vpop.permute.xlu0 %871 }
  0xc6   :  { %2387 = vperm.xlu0 %3802, %v2353_v2   ;;  %v4775_v2 = vpop.permute.xlu1 %876 }
  0xc7   :  { %2392 = vperm.xlu1 %3803, %v2354_v3  }
  0xca   :  { %2477 = vperm.xlu0 %3802, %v2371_v6  }
  0xcb   :  { %2482 = vperm.xlu1 %3803, %v2372_v7  }
  0xce   :  { %2397 = vperm.xlu0 %3802, %v2355_v8  }
  0xcf   :  { %2402 = vperm.xlu1 %3803, %v2356_v10  }
  0xd2   :  { %2487 = vperm.xlu0 %3802, %v2373_v12  }
  0xd3   :  { %2492 = vperm.xlu1 %3803, %v2374_v13  }
  0xd6   :  { %2407 = vperm.xlu0 %3802, %v2357_v16  }
  0xd7   :  { %2412 = vperm.xlu1 %3803, %v2358_v17  }
  0xda   :  { %2497 = vperm.xlu0 %3802, %v2375_v18  }
  0xdb   :  { %2502 = vperm.xlu1 %3803, %v2376_v20  }
  0xde   :  { %2417 = vperm.xlu0 %3802, %v2359_v22  }
  0xdf   :  { %2422 = vperm.xlu1 %3803, %v2360_v23  }
  0xe2   :  { %2507 = vperm.xlu0 %3802, %v2377_v26  }
  0xe3   :  { %2512 = vperm.xlu1 %3803, %v2378_v27  }
  0xe6   :  { %2427 = vperm.xlu0 %3802, %v2361_v28  }
  0xe7   :  { %2432 = vperm.xlu1 %3803, %v2362_v30  }
  0xea   :  { %2517 = vperm.xlu0 %3802, %v2379_v32  }
  0xeb   :  { %2522 = vperm.xlu1 %3803, %v2380_v33  }
  0xee   :  { %2437 = vperm.xlu0 %3802, %v2363_v35  }
  0xef   :  { %2442 = vperm.xlu1 %3803, %v2364_v37  }
  0xf2   :  { %2527 = vperm.xlu0 %3802, %v2381_v39  }
  0xf3   :  { %2532 = vperm.xlu1 %3803, %v2382_v40  }
  0xf6   :  { %2447 = vperm.xlu0 %3802, %v2365_v44  }
  0xf7   :  { %2452 = vperm.xlu1 %3803, %v2366_v46  }
  0xfa   :  { %2537 = vperm.xlu0 %3802, %v2383_v51  }
  0xfb   :  { %2542 = vperm.xlu1 %3803, %v2384_v52  }
  0xfe   :  { %2457 = vperm.xlu0 %3802, %v2367_v54  }
  0xff   :  { %2462 = vperm.xlu1 %3803, %v2368_v57  }
 0x102   :  { %2952 = vperm.xlu0 %3802, %v2948_v61  }
 0x103   :  { %2957 = vperm.xlu1 %3803, %v2949_v62  }
 0x125   :  { %v3695_v3 = vpop.f32.mrb[0].mxu0 }
 0x126   :  { %v960_v6 = vadd.f32 %v3695_v3, %v4590_v49  ;;  %v608_v7 = vpop.f32.mrb[1].mxu0 }
 0x127   :  { %v959_v8 = vadd.f32 %v4580_v45, %v608_v7 }
 0x128   :  { %v992_v10 = vmul.f32 0.01, %v960_v6 }
 0x129   :  { %v991_v12 = vmul.f32 0.01, %v959_v8  ;;  %v3698_v13 = vpop.f32.mrb[2].mxu0 }
 0x12a   :  { %v1024_v16 = vmax.f32 %v960_v6, %v992_v10  ;;  %v962_v17 = vadd.f32 %v3698_v13, %v4616_v59  ;;  %v618_v18 = vpop.f32.mrb[3].mxu0 }
 0x12b   :  { %v1023_v20 = vmax.f32 %v959_v8, %v991_v12  ;;  %v961_v22 = vadd.f32 %v4614_v58, %v618_v18 }
 0x12c   :  { %v994_v23 = vmul.f32 0.01, %v962_v17 }
 0x12d   :  { %v993_v26 = vmul.f32 0.01, %v961_v22  ;;  %v3701_v27 = vpop.f32.mrb[4].mxu0  ;;  %v4781_v28 = vpack.c.bf16 %v1024_v16, %v1023_v20 }
 0x12e   :  { %v1026_v30 = vmax.f32 %v962_v17, %v994_v23  ;;  %v964_v49 = vadd.f32 %v3701_v27, %v4642_v5  ;;  %v628_v32 = vpop.f32.mrb[5].mxu0 }
 0x12f   :  { %v1025_v45 = vmax.f32 %v961_v22, %v993_v26  ;;  %v963_v33 = vadd.f32 %v4640_v4, %v628_v32 }
 0x130   :  { %v996_v35 = vmul.f32 0.01, %v964_v49 }
 0x131   :  { %v995_v37 = vmul.f32 0.01, %v963_v33  ;;  %v3704_v38 = vpop.f32.mrb[6].mxu0  ;;  %v4785_v59 = vpack.c.bf16 %v1026_v30, %v1025_v45 }
 0x132   :  { %v1028_v39 = vmax.f32 %v964_v49, %v996_v35  ;;  %v966_v58 = vadd.f32 %v3704_v38, %v4668_v15  ;;  %v638_v40 = vpop.f32.mrb[7].mxu0 }
 0x133   :  { %v1027_v44 = vmax.f32 %v963_v33, %v995_v37  ;;  %v965_v46 = vadd.f32 %v4666_v14, %v638_v40 }
 0x134   :  { %v998_v51 = vmul.f32 0.01, %v966_v58 }
 0x135   :  { %v997_v52 = vmul.f32 0.01, %v965_v46  ;;  %v3707_v54 = vpop.f32.mrb[8].mxu0  ;;  %v4789_v5 = vpack.c.bf16 %v1028_v39, %v1027_v44 }
 0x136   :  { %v1030_v57 = vmax.f32 %v966_v58, %v998_v51  ;;  %v968_v4 = vadd.f32 %v3707_v54, %v4694_v25  ;;  %v648_v61 = vpop.f32.mrb[9].mxu0 }
 0x137   :  { %v1029_v62 = vmax.f32 %v965_v46, %v997_v52  ;;  %v967_v3 = vadd.f32 %v4692_v24, %v648_v61 }
 0x138   :  { %v1000_v6 = vmul.f32 0.01, %v968_v4 }
 0x139   :  { %v999_v7 = vmul.f32 0.01, %v967_v3  ;;  %v3710_v8 = vpop.f32.mrb[10].mxu0  ;;  %v4793_v15 = vpack.c.bf16 %v1030_v57, %v1029_v62 }
 0x13a   :  { %v1032_v10 = vmax.f32 %v968_v4, %v1000_v6  ;;  %v970_v14 = vadd.f32 %v3710_v8, %v4723_v36  ;;  %v658_v12 = vpop.f32.mrb[11].mxu0 }
 0x13b   :  { %v1031_v13 = vmax.f32 %v967_v3, %v999_v7  ;;  %v969_v16 = vadd.f32 %v4718_v34, %v658_v12 }
 0x13c   :  { %v1002_v17 = vmul.f32 0.01, %v970_v14 }
 0x13d   :  { %v1001_v18 = vmul.f32 0.01, %v969_v16  ;;  %v3713_v20 = vpop.f32.mrb[12].mxu0  ;;  %v4797_v25 = vpack.c.bf16 %v1032_v10, %v1031_v13 }
 0x13e   :  { %v1034_v22 = vmax.f32 %v970_v14, %v1002_v17  ;;  %v972_v24 = vadd.f32 %v3713_v20, %v4749_v50  ;;  %v668_v23 = vpop.f32.mrb[13].mxu0 }
 0x13f   :  { %v1033_v26 = vmax.f32 %v969_v16, %v1001_v18  ;;  %v971_v27 = vadd.f32 %v4747_v47, %v668_v23 }
 0x140   :  { %v1004_v30 = vmul.f32 0.01, %v972_v24 }
 0x141   :  { %v1003_v49 = vmul.f32 0.01, %v971_v27  ;;  %v3716_v32 = vpop.f32.mrb[14].mxu0  ;;  %v4801_v36 = vpack.c.bf16 %v1034_v22, %v1033_v26 }
 0x142   :  { %v1036_v45 = vmax.f32 %v972_v24, %v1004_v30  ;;  %v974_v34 = vadd.f32 %v3716_v32, %v4775_v2  ;;  %v678_v33 = vpop.f32.mrb[15].mxu0 }
 0x143   :  { %v1035_v35 = vmax.f32 %v971_v27, %v1003_v49  ;;  %v973_v37 = vadd.f32 %v4773_v0, %v678_v33 }
 0x144   :  { %v1006_v38 = vmul.f32 0.01, %v974_v34 }
 0x145   :  { %v1005_v39 = vmul.f32 0.01, %v973_v37  ;;  %v3719_v58 = vpop.f32.mrb[16].mxu0  ;;  %v4805_v50 = vpack.c.bf16 %v1036_v45, %v1035_v35 }
 0x146   :  { %v1038_v40 = vmax.f32 %v974_v34, %v1006_v38  ;;  %v976_v47 = vadd.f32 %v3719_v58, %v4588_v48  ;;  %v688_v44 = vpop.f32.mrb[17].mxu0 }
 0x147   :  { %v1037_v46 = vmax.f32 %v973_v37, %v1005_v39  ;;  %v975_v51 = vadd.f32 %v4575_v43, %v688_v44 }
 0x148   :  { %v1008_v52 = vmul.f32 0.01, %v976_v47 }
 0x149   :  { %v1007_v54 = vmul.f32 0.01, %v975_v51  ;;  %v3722_v57 = vpop.f32.mrb[18].mxu0  ;;  %v4809_v2 = vpack.c.bf16 %v1038_v40, %v1037_v46 }
 0x14a   :  { %v978_v4 = vadd.f32 %v3722_v57, %v4606_v55  ;;  %v698_v0 = vpop.f32.mrb[19].mxu0  ;;  %v1040_v61 = vmax.f32 %v976_v47, %v1008_v52 }
 0x14b   :  { %v977_v62 = vadd.f32 %v4601_v53, %v698_v0  ;;  %v1039_v3 = vmax.f32 %v975_v51, %v1007_v54 }
 0x14c   :  { %v1010_v6 = vmul.f32 0.01, %v978_v4 }
 0x14d   :  { %v1009_v7 = vmul.f32 0.01, %v977_v62  ;;  %v3725_v8 = vpop.f32.mrb[20].mxu0  ;;  %v1063_v48 = vpack.c.bf16 %v1040_v61, %v1039_v3 }
 0x14e   :  { %v1042_v10 = vmax.f32 %v978_v4, %v1010_v6  ;;  %v980_v14 = vadd.f32 %v3725_v8, %v4632_v1  ;;  %v708_v43 = vpop.f32.mrb[21].mxu0  ;;  %v3815_v8 = vld [vmem:[%s5354_s5 + $0x30] ss:$8 sps:$4 sm:$0xff]  }
 0x14f   :  { %v1041_v12 = vmax.f32 %v977_v62, %v1009_v7  ;;  %v979_v13 = vadd.f32 %v4627_v63, %v708_v43  ;;  %3259 = vmatprep.subr.bf16.mxu1 %v1063_v48  ;;  %v3813_v7 = vld [vmem:[%s5354_s5 + $0x34] ss:$8 sps:$4 sm:$0xff]   ;;  %v3816_v48 = vld [vmem:[%s5354_s5 + $0x44] ss:$8 sps:$4 sm:$0xff]   ;;  %v3821_v43 = vld [vmem:[%s5354_s5 + $0x50] ss:$8 sps:$4 sm:$0xff]  }
 0x150   :  { %v1012_v16 = vmul.f32 0.01, %v980_v14  ;;  %3260 = vmatpush3.bf16.msra.mxu1 %v4781_v28 }
 0x151   :  { %v1011_v55 = vmul.f32 0.01, %v979_v13  ;;  %v3728_v17 = vpop.f32.mrb[22].mxu0  ;;  %v1064_v18 = vpack.c.bf16 %v1042_v10, %v1041_v12  ;;  %v3818_v10 = vld [vmem:[%s5354_s5 + $0x40] ss:$8 sps:$4 sm:$0xff]  }
 0x152   :  { %v1044_v53 = vmax.f32 %v980_v14, %v1012_v16  ;;  %v982_v20 = vadd.f32 %v3728_v17, %v4658_v11  ;;  %v718_v22 = vpop.f32.mrb[23].mxu0  ;;  %v3819_v14 = vld [vmem:[%s5354_s5 + $0x54] ss:$8 sps:$4 sm:$0xff]   ;;  %v3822_v12 = vld [vmem:[%s5354_s5 + $0x64] ss:$8 sps:$4 sm:$0xff]  }
 0x153   :  { %v1043_v24 = vmax.f32 %v979_v13, %v1011_v55  ;;  %v981_v23 = vadd.f32 %v4653_v9, %v718_v22  ;;  %3261 = vmatprep.subr.bf16.mxu1 %v1064_v18  ;;  %v3824_v13 = vld [vmem:[%s5354_s5 + $0x60] ss:$8 sps:$4 sm:$0xff]   ;;  %v3825_v16 = vld [vmem:[%s5354_s5 + $0x74] ss:$8 sps:$4 sm:$0xff]   ;;  %v3827_v55 = vld [vmem:[%s5354_s5 + $0x70] ss:$8 sps:$4 sm:$0xff]  }
 0x154   :  { %v1014_v1 = vmul.f32 0.01, %v982_v20  ;;  %3262 = vmatpush3.bf16.msra.mxu1 %v4785_v59  ;;  %v3828_v17 = vld [vmem:[%s5354_s5 + $0x84] ss:$8 sps:$4 sm:$0xff]   ;;  %v3830_v18 = vld [vmem:[%s5354_s5 + $0x80] ss:$8 sps:$4 sm:$0xff]  }
 0x155   :  { %v1013_v26 = vmul.f32 0.01, %v981_v23  ;;  %v3731_v63 = vpop.f32.mrb[24].mxu0  ;;  %v1065_v27 = vpack.c.bf16 %v1044_v53, %v1043_v24  ;;  %v3831_v53 = vld [vmem:[%s5354_s5 + $0x94] ss:$8 sps:$4 sm:$0xff]  }
 0x156   :  { %v1046_v30 = vmax.f32 %v982_v20, %v1014_v1  ;;  %v984_v28 = vadd.f32 %v3731_v63, %v4684_v21  ;;  %v728_v49 = vpop.f32.mrb[25].mxu0  ;;  %v3833_v20 = vld [vmem:[%s5354_s5 + $0x90] ss:$8 sps:$4 sm:$0xff]   ;;  %v3834_v22 = vld [vmem:[%s5354_s5 + $0xa4] ss:$8 sps:$4 sm:$0xff]  }
 0x157   :  { %v1045_v32 = vmax.f32 %v981_v23, %v1013_v26  ;;  %v983_v45 = vadd.f32 %v4679_v19, %v728_v49  ;;  %3263 = vmatprep.subr.bf16.mxu1 %v1065_v27  ;;  %v3836_v24 = vld [vmem:[%s5354_s5 + $0xa0] ss:$8 sps:$4 sm:$0xff]   ;;  %v3837_v23 = vld [vmem:[%s5354_s5 + $0xb4] ss:$8 sps:$4 sm:$0xff]   ;;  %v3839_v1 = vld [vmem:[%s5354_s5 + $0xb0] ss:$8 sps:$4 sm:$0xff]  }
 0x158   :  { %v1016_v11 = vmul.f32 0.01, %v984_v28  ;;  %3264 = vmatpush3.bf16.msra.mxu1 %v4789_v5  ;;  %v3840_v26 = vld [vmem:[%s5354_s5 + $0xc4] ss:$8 sps:$4 sm:$0xff]   ;;  %v3842_v63 = vld [vmem:[%s5354_s5 + $0xc0] ss:$8 sps:$4 sm:$0xff]  }
 0x159   :  { %v1015_v34 = vmul.f32 0.01, %v983_v45  ;;  %v3734_v9 = vpop.f32.mrb[26].mxu0  ;;  %v1066_v33 = vpack.c.bf16 %v1046_v30, %v1045_v32  ;;  %v3843_v27 = vld [vmem:[%s5354_s5 + $0xd4] ss:$8 sps:$4 sm:$0xff]  }
 0x15a   :  { %v1048_v35 = vmax.f32 %v984_v28, %v1016_v11  ;;  %v986_v59 = vadd.f32 %v3734_v9, %v4710_v31  ;;  %v738_v37 = vpop.f32.mrb[27].mxu0  ;;  %v3845_v30 = vld [vmem:[%s5354_s5 + $0xd0] ss:$8 sps:$4 sm:$0xff]   ;;  %v3846_v28 = vld [vmem:[%s5354_s5 + $0xe4] ss:$8 sps:$4 sm:$0xff]   ;;  %v4926_v11 = vpop.permute.xlu0 %1217 }
 0x15b   :  { %v1047_v38 = vmax.f32 %v983_v45, %v1015_v34  ;;  %v985_v39 = vadd.f32 %v4705_v29, %v738_v37  ;;  %3265 = vmatprep.subr.bf16.mxu1 %v1066_v33  ;;  %v3848_v49 = vld [vmem:[%s5354_s5 + $0xe0] ss:$8 sps:$4 sm:$0xff]   ;;  %v3849_v32 = vld [vmem:[%s5354_s5 + $0xf4] ss:$8 sps:$4 sm:$0xff]   ;;  %v3851_v45 = vld [vmem:[%s5354_s5 + $0xf0] ss:$8 sps:$4 sm:$0xff]   ;;  %v4928_v34 = vpop.permute.xlu1 %1222 }
 0x15c   :  { %v1018_v21 = vmul.f32 0.01, %v986_v59  ;;  %3266 = vmatpush3.bf16.msra.mxu1 %v4793_v15 }
 0x15d   :  { %v1017_v58 = vmul.f32 0.01, %v985_v39  ;;  %v3737_v19 = vpop.f32.mrb[28].mxu0  ;;  %v1067_v40 = vpack.c.bf16 %v1048_v35, %v1047_v38 }
 0x15e   :  { %v1050_v47 = vmax.f32 %v986_v59, %v1018_v21  ;;  %v988_v5 = vadd.f32 %v3737_v19, %v4739_v42  ;;  %v748_v44 = vpop.f32.mrb[29].mxu0  ;;  %v1138_v9 = vpop.permute.xlu0 %1137 }
 0x15f   :  { %v1049_v46 = vmax.f32 %v985_v39, %v1017_v58  ;;  %v987_v51 = vadd.f32 %v4737_v41, %v748_v44  ;;  %3267 = vmatprep.subr.bf16.mxu1 %v1067_v40  ;;  %v1143_v33 = vpop.permute.xlu1 %1142 }
 0x160   :  { %v1020_v31 = vmul.f32 0.01, %v988_v5  ;;  %3268 = vmatpush3.bf16.msra.mxu1 %v4797_v25 }
 0x161   :  { %v1019_v52 = vmul.f32 0.01, %v987_v51  ;;  %v3740_v29 = vpop.f32.mrb[30].mxu0  ;;  %v1068_v54 = vpack.c.bf16 %v1050_v47, %v1049_v46 }
 0x162   :  { %v1052_v57 = vmax.f32 %v988_v5, %v1020_v31  ;;  %v990_v15 = vadd.f32 %v3740_v29, %v4765_v60  ;;  %v758_v4 = vpop.f32.mrb[31].mxu0  ;;  %v3804_v60 = vld [vmem:[%s5354_s5] ss:$8 sps:$4 sm:$0xff]   ;;  %v4930_v35 = vpop.permute.xlu0 %1227 }
 0x163   :  { %v1051_v0 = vmax.f32 %v987_v51, %v1019_v52  ;;  %v989_v61 = vadd.f32 %v4760_v56, %v758_v4  ;;  %3269 = vmatprep.subr.bf16.mxu1 %v1068_v54  ;;  %v3807_v56 = vld [vmem:[%s5354_s5 + $0x14] ss:$8 sps:$4 sm:$0xff]   ;;  %v4932_v59 = vpop.permute.xlu1 %1232 }
 0x164   :  { %v1022_v42 = vmul.f32 0.01, %v990_v15  ;;  %3270 = vmatpush3.bf16.msra.mxu1 %v4801_v36  ;;  %v3809_v36 = vld [vmem:[%s5354_s5 + $0x10] ss:$8 sps:$4 sm:$0xff]  }
 0x165   :  { %v1021_v62 = vmul.f32 0.01, %v989_v61  ;;  %v1069_v41 = vpack.c.bf16 %v1052_v57, %v1051_v0  ;;  %v3854_v0 = vld [vmem:[%s5356_s7 + $0x4] ss:$8 sps:$4 sm:$0xff]  }
 0x166   :  { %v1054_v3 = vmax.f32 %v990_v15, %v1022_v42  ;;  %v1148_v37 = vpop.permute.xlu0 %1147  ;;  %2112 = vmatprep.mubr.bf16.mxu0 %v3854_v0 }
 0x167   :  { %v1053_v6 = vmax.f32 %v989_v61, %v1021_v62  ;;  %3271 = vmatprep.subr.bf16.mxu1 %v1069_v41  ;;  %v1153_v38 = vpop.permute.xlu1 %1152 }
 0x168   :  { %3272 = vmatpush3.bf16.msra.mxu1 %v4805_v50  ;;  %v3810_v50 = vld [vmem:[%s5354_s5 + $0x24] ss:$8 sps:$4 sm:$0xff]  }
 0x169   :  { %v1070_v25 = vpack.c.bf16 %v1054_v3, %v1053_v6 }
 0x16a   :  { %v4934_v39 = vpop.permute.xlu0 %1237 }
 0x16b   :  { %3273 = vmatprep.subr.bf16.mxu1 %v1070_v25  ;;  %v4936_v21 = vpop.permute.xlu1 %1242 }
 0x16c   :  { %3274 = vmatpush3.bf16.msra.mxu1 %v4809_v2  ;;  %v3812_v2 = vld [vmem:[%s5354_s5 + $0x20] ss:$8 sps:$4 sm:$0xff]  }
 0x16e   :  { %v1158_v58 = vpop.permute.xlu0 %1157 }
 0x16f   :  { %1488 = vmatmul.mubr.bf16.vlgmr.msra.gmra.mrb[0].mxu1 %v3804_v60  ;;  %v1163_v40 = vpop.permute.xlu1 %1162 }
 0x170   :  { %1495 = vmatprep.mubr.bf16.mxu1 %v3807_v56 }
 0x172   :  { %v4938_v52 = vpop.permute.xlu0 %1247 }
 0x173   :  { %v4940_v57 = vpop.permute.xlu1 %1252 }
 0x176   :  { %v1168_v6 = vpop.permute.xlu0 %1167 }
 0x177   :  { %1496 = vmatmul.mubr.bf16.gmra.mrb[4].mxu1 %v3809_v36 }
 0x178   :  { %1503 = vmatprep.mubr.bf16.mxu1 %v3810_v50  ;;  %v1173_v50 = vpop.permute.xlu1 %1172 }
 0x17f   :  { %1504 = vmatmul.mubr.bf16.gmra.mrb[8].mxu1 %v3812_v2 }
 0x180   :  { %1511 = vmatprep.mubr.bf16.mxu1 %v3813_v7 }
 0x187   :  { %1512 = vmatmul.mubr.bf16.gmra.mrb[12].mxu1 %v3815_v8 }
 0x188   :  { %1519 = vmatprep.mubr.bf16.mxu1 %v3816_v48 }
 0x18f   :  { %1520 = vmatmul.mubr.bf16.gmra.mrb[16].mxu1 %v3818_v10  ;;  %v4947_v10 = vpop.permute.xlu0 %1257 }
 0x190   :  { %1527 = vmatprep.mubr.bf16.mxu1 %v3819_v14 }
 0x197   :  { %1528 = vmatmul.mubr.bf16.gmra.mrb[20].mxu1 %v3821_v43 }
 0x198   :  { %1535 = vmatprep.mubr.bf16.mxu1 %v3822_v12 }
 0x19f   :  { %1536 = vmatmul.mubr.bf16.gmra.mrb[24].mxu1 %v3824_v13 }
 0x1a0   :  { %1543 = vmatprep.mubr.bf16.mxu1 %v3825_v16 }
 0x1a7   :  { %1544 = vmatmul.mubr.bf16.gmra.mrb[28].mxu1 %v3827_v55  ;;  %v4949_v55 = vpop.permute.xlu1 %1262 }
 0x1a8   :  { %1551 = vmatprep.mubr.bf16.mxu1 %v3828_v17 }
 0x1af   :  { %1552 = vmatmul.mubr.bf16.gmra.mrb[32].mxu1 %v3830_v18 }
 0x1b0   :  { %1559 = vmatprep.mubr.bf16.mxu1 %v3831_v53 }
 0x1b7   :  { %1560 = vmatmul.mubr.bf16.gmra.mrb[36].mxu1 %v3833_v20 }
 0x1b8   :  { %1567 = vmatprep.mubr.bf16.mxu1 %v3834_v22 }
 0x1bf   :  { %1568 = vmatmul.mubr.bf16.gmra.mrb[40].mxu1 %v3836_v24 }
 0x1c0   :  { %1575 = vmatprep.mubr.bf16.mxu1 %v3837_v23  ;;  %v1178_v23 = vpop.permute.xlu0 %1177 }
 0x1c7   :  { %1576 = vmatmul.mubr.bf16.gmra.mrb[44].mxu1 %v3839_v1 }
 0x1c8   :  { %1583 = vmatprep.mubr.bf16.mxu1 %v3840_v26 }
 0x1cf   :  { %1584 = vmatmul.mubr.bf16.gmra.mrb[48].mxu1 %v3842_v63  ;;  %v1183_v63 = vpop.permute.xlu1 %1182 }
 0x1d0   :  { %1591 = vmatprep.mubr.bf16.mxu1 %v3843_v27 }
 0x1d7   :  { %1592 = vmatmul.mubr.bf16.gmra.mrb[52].mxu1 %v3845_v30 }
 0x1d8   :  { %1599 = vmatprep.mubr.bf16.mxu1 %v3846_v28 }
 0x1df   :  { %1600 = vmatmul.mubr.bf16.gmra.mrb[56].mxu1 %v3848_v49 }
 0x1e0   :  { %1607 = vmatprep.mubr.bf16.mxu1 %v3849_v32 }
 0x1e7   :  { %1608 = vmatmul.mubr.bf16.gmra.mrb[60].mxu1 %v3851_v45 }
 0x242   :  { %v3275_v19 = vpop.f32.mrb[0].mxu1 }
 0x243   :  { %v3276_v47 = vpop.f32.mrb[1].mxu1 }
 0x244   :  { %v3277_v5 = vadd.f32 %v3276_v47, %v3275_v19  ;;  %v3278_v44 = vpop.f32.mrb[2].mxu1  ;;  %v4957_v47 = vpop.permute.xlu1 %1272 }
 0x245   :  { %v3279_v46 = vpop.f32.mrb[3].mxu1 }
 0x246   :  { %v1490_v51 = vadd.f32 %v3277_v5, %v1138_v9  ;;  %v3280_v31 = vadd.f32 %v3279_v46, %v3278_v44 }
 0x248   :  { %v1616_v29 = vmul.f32 0.01, %v1490_v51  ;;  %v1493_v54 = vadd.f32 %v3280_v31, %v1143_v33 }
 0x24a   :  { %v1617_v15 = vmul.f32 0.01, %v1493_v54  ;;  %v3281_v4 = vpop.f32.mrb[4].mxu1  ;;  %v1648_v42 = vmax.f32 %v1490_v51, %v1616_v29 }
 0x24b   :  { %v3282_v61 = vpop.f32.mrb[5].mxu1 }
 0x24c   :  { %v1649_v62 = vmax.f32 %v1493_v54, %v1617_v15  ;;  %v3283_v41 = vadd.f32 %v3282_v61, %v3281_v4  ;;  %v3284_v3 = vpop.f32.mrb[6].mxu1 }
 0x24d   :  { %v3285_v25 = vpop.f32.mrb[7].mxu1 }
 0x24e   :  { %v4945_v60 = vpack.c.bf16 %v1649_v62, %v1648_v42  ;;  %v1498_v56 = vadd.f32 %v3283_v41, %v1148_v37  ;;  %v3286_v36 = vadd.f32 %v3285_v25, %v3284_v3  ;;  %v1193_v42 = vpop.permute.xlu1 %1192 }
 0x250   :  { %v1618_v2 = vmul.f32 0.01, %v1498_v56  ;;  %v1501_v7 = vadd.f32 %v3286_v36, %v1153_v38  ;;  %v4955_v38 = vpop.permute.xlu0 %1267 }
 0x252   :  { %v1619_v8 = vmul.f32 0.01, %v1501_v7  ;;  %v3287_v48 = vpop.f32.mrb[8].mxu1  ;;  %v1650_v43 = vmax.f32 %v1498_v56, %v1618_v2 }
 0x253   :  { %v3288_v14 = vpop.f32.mrb[9].mxu1 }
 0x254   :  { %v1651_v12 = vmax.f32 %v1501_v7, %v1619_v8  ;;  %v3289_v13 = vadd.f32 %v3288_v14, %v3287_v48  ;;  %v3290_v16 = vpop.f32.mrb[10].mxu1  ;;  %v1188_v54 = vpop.permute.xlu0 %1187 }
 0x255   :  { %v3291_v17 = vpop.f32.mrb[11].mxu1  ;;  %v4963_v8 = vpop.permute.xlu1 %1282 }
 0x256   :  { %v4951_v18 = vpack.c.bf16 %v1651_v12, %v1650_v43  ;;  %v1506_v53 = vadd.f32 %v3289_v13, %v1158_v58  ;;  %v3292_v20 = vadd.f32 %v3291_v17, %v3290_v16 }
 0x258   :  { %v1620_v22 = vmul.f32 0.01, %v1506_v53  ;;  %v1509_v24 = vadd.f32 %v3292_v20, %v1163_v40  ;;  %v4961_v25 = vpop.permute.xlu0 %1277 }
 0x25a   :  { %v1621_v1 = vmul.f32 0.01, %v1509_v24  ;;  %v3293_v26 = vpop.f32.mrb[12].mxu1  ;;  %v1652_v30 = vmax.f32 %v1506_v53, %v1620_v22  ;;  %v1203_v22 = vpop.permute.xlu1 %1202 }
 0x25b   :  { %v3294_v27 = vpop.f32.mrb[13].mxu1 }
 0x25c   :  { %v1653_v28 = vmax.f32 %v1509_v24, %v1621_v1  ;;  %v3295_v49 = vadd.f32 %v3294_v27, %v3293_v26  ;;  %v3296_v32 = vpop.f32.mrb[14].mxu1  ;;  %v1198_v17 = vpop.permute.xlu0 %1197 }
 0x25d   :  { %v3297_v45 = vpop.f32.mrb[15].mxu1 }
 0x25e   :  { %v4953_v9 = vpack.c.bf16 %v1653_v28, %v1652_v30  ;;  %v1514_v33 = vadd.f32 %v3295_v49, %v1168_v6  ;;  %v3298_v37 = vadd.f32 %v3297_v45, %v3296_v32 }
 0x260   :  { %v1622_v58 = vmul.f32 0.01, %v1514_v33  ;;  %v1517_v19 = vadd.f32 %v3298_v37, %v1173_v50  ;;  %v4969_v32 = vpop.permute.xlu0 %1287  ;;  %v4971_v37 = vpop.permute.xlu1 %1292 }
 0x262   :  { %v1623_v40 = vmul.f32 0.01, %v1517_v19  ;;  %v3299_v5 = vpop.f32.mrb[16].mxu1  ;;  %v1654_v46 = vmax.f32 %v1514_v33, %v1622_v58 }
 0x263   :  { %v3300_v44 = vpop.f32.mrb[17].mxu1 }
 0x264   :  { %v1655_v51 = vmax.f32 %v1517_v19, %v1623_v40  ;;  %v3301_v31 = vadd.f32 %v3300_v44, %v3299_v5  ;;  %v3302_v29 = vpop.f32.mrb[18].mxu1 }
 0x265   :  { %v3303_v15 = vpop.f32.mrb[19].mxu1 }
 0x266   :  { %v4959_v4 = vpack.c.bf16 %v1655_v51, %v1654_v46  ;;  %v1522_v0 = vadd.f32 %v3301_v31, %v1178_v23  ;;  %v3304_v61 = vadd.f32 %v3303_v15, %v3302_v29  ;;  %v1208_v31 = vpop.permute.xlu0 %1207 }
 0x268   :  { %v1624_v62 = vmul.f32 0.01, %v1522_v0  ;;  %v1525_v41 = vadd.f32 %v3304_v61, %v1183_v63  ;;  %v1213_v61 = vpop.permute.xlu1 %1212 }
 0x26a   :  { %v1625_v3 = vmul.f32 0.01, %v1525_v41  ;;  %v3305_v6 = vpop.f32.mrb[20].mxu1  ;;  %v1656_v36 = vmax.f32 %v1522_v0, %v1624_v62 }
 0x26b   :  { %v3306_v56 = vpop.f32.mrb[21].mxu1 }
 0x26c   :  { %v1657_v50 = vmax.f32 %v1525_v41, %v1625_v3  ;;  %v3307_v2 = vadd.f32 %v3306_v56, %v3305_v6  ;;  %v3308_v7 = vpop.f32.mrb[22].mxu1 }
 0x26d   :  { %v3309_v48 = vpop.f32.mrb[23].mxu1 }
 0x26e   :  { %v4965_v14 = vpack.c.bf16 %v1657_v50, %v1656_v36  ;;  %v1530_v43 = vadd.f32 %v3307_v2, %v1188_v54  ;;  %v3310_v12 = vadd.f32 %v3309_v48, %v3308_v7 }
 0x270   :  { %v1626_v13 = vmul.f32 0.01, %v1530_v43  ;;  %v1533_v16 = vadd.f32 %v3310_v12, %v1193_v42 }
 0x272   :  { %v1627_v53 = vmul.f32 0.01, %v1533_v16  ;;  %v3311_v20 = vpop.f32.mrb[24].mxu1  ;;  %v1658_v23 = vmax.f32 %v1530_v43, %v1626_v13 }
 0x273   :  { %v3312_v24 = vpop.f32.mrb[25].mxu1 }
 0x274   :  { %v1659_v1 = vmax.f32 %v1533_v16, %v1627_v53  ;;  %v3313_v26 = vadd.f32 %v3312_v24, %v3311_v20  ;;  %v3314_v63 = vpop.f32.mrb[26].mxu1 }
 0x275   :  { %v3315_v27 = vpop.f32.mrb[27].mxu1 }
 0x276   :  { %v4967_v30 = vpack.c.bf16 %v1659_v1, %v1658_v23  ;;  %v1538_v28 = vadd.f32 %v3313_v26, %v1198_v17  ;;  %v3316_v49 = vadd.f32 %v3315_v27, %v3314_v63 }
 0x278   :  { %v1628_v45 = vmul.f32 0.01, %v1538_v28  ;;  %v1541_v33 = vadd.f32 %v3316_v49, %v1203_v22 }
 0x27a   :  { %v1629_v58 = vmul.f32 0.01, %v1541_v33  ;;  %v3317_v19 = vpop.f32.mrb[28].mxu1  ;;  %v1660_v5 = vmax.f32 %v1538_v28, %v1628_v45 }
 0x27b   :  { %v3318_v40 = vpop.f32.mrb[29].mxu1 }
 0x27c   :  { %v1661_v44 = vmax.f32 %v1541_v33, %v1629_v58  ;;  %v3319_v46 = vadd.f32 %v3318_v40, %v3317_v19  ;;  %v3320_v51 = vpop.f32.mrb[30].mxu1 }
 0x27d   :  { %v3321_v29 = vpop.f32.mrb[31].mxu1 }
 0x27e   :  { %v4973_v54 = vpack.c.bf16 %v1661_v44, %v1660_v5  ;;  %v1546_v15 = vadd.f32 %v3319_v46, %v1208_v31  ;;  %v3322_v0 = vadd.f32 %v3321_v29, %v3320_v51 }
 0x280   :  { %v1630_v42 = vmul.f32 0.01, %v1546_v15  ;;  %v1549_v62 = vadd.f32 %v3322_v0, %v1213_v61 }
 0x282   :  { %v1631_v41 = vmul.f32 0.01, %v1549_v62  ;;  %v3323_v3 = vpop.f32.mrb[32].mxu1  ;;  %v1662_v56 = vmax.f32 %v1546_v15, %v1630_v42 }
 0x283   :  { %v3324_v6 = vpop.f32.mrb[33].mxu1 }
 0x284   :  { %v1663_v36 = vmax.f32 %v1549_v62, %v1631_v41  ;;  %v3325_v50 = vadd.f32 %v3324_v6, %v3323_v3  ;;  %v3326_v2 = vpop.f32.mrb[34].mxu1 }
 0x285   :  { %v3327_v7 = vpop.f32.mrb[35].mxu1 }
 0x286   :  { %v4975_v48 = vpack.c.bf16 %v1663_v36, %v1662_v56  ;;  %v1554_v43 = vadd.f32 %v3325_v50, %v4926_v11  ;;  %v3328_v12 = vadd.f32 %v3327_v7, %v3326_v2 }
 0x288   :  { %v1632_v13 = vmul.f32 0.01, %v1554_v43  ;;  %v1557_v16 = vadd.f32 %v3328_v12, %v4928_v34 }
 0x28a   :  { %v1633_v17 = vmul.f32 0.01, %v1557_v16  ;;  %v3329_v53 = vpop.f32.mrb[36].mxu1  ;;  %v1664_v22 = vmax.f32 %v1554_v43, %v1632_v13 }
 0x28b   :  { %v3330_v20 = vpop.f32.mrb[37].mxu1 }
 0x28c   :  { %v1665_v24 = vmax.f32 %v1557_v16, %v1633_v17  ;;  %v3331_v23 = vadd.f32 %v3330_v20, %v3329_v53  ;;  %v3332_v1 = vpop.f32.mrb[38].mxu1 }
 0x28d   :  { %v3333_v26 = vpop.f32.mrb[39].mxu1 }
 0x28e   :  { %v1562_v63 = vadd.f32 %v3331_v23, %v4930_v35  ;;  %v3334_v27 = vadd.f32 %v3333_v26, %v3332_v1  ;;  %v1688_v28 = vpack.c.bf16 %v1665_v24, %v1664_v22 }
 0x290   :  { %v1634_v49 = vmul.f32 0.01, %v1562_v63  ;;  %v1565_v45 = vadd.f32 %v3334_v27, %v4932_v59  ;;  %3371 = vmatprep.subr.bf16.mxu0 %v1688_v28 }
 0x291   :  { %3372 = vmatpush3.bf16.msra.mxu0 %v4945_v60 }
 0x292   :  { %v1635_v11 = vmul.f32 0.01, %v1565_v45  ;;  %v3335_v34 = vpop.f32.mrb[40].mxu1  ;;  %v1666_v58 = vmax.f32 %v1562_v63, %v1634_v49 }
 0x293   :  { %v3336_v33 = vpop.f32.mrb[41].mxu1 }
 0x294   :  { %v1667_v19 = vmax.f32 %v1565_v45, %v1635_v11  ;;  %v3337_v40 = vadd.f32 %v3336_v33, %v3335_v34  ;;  %v3338_v5 = vpop.f32.mrb[42].mxu1 }
 0x295   :  { %v3339_v44 = vpop.f32.mrb[43].mxu1 }
 0x296   :  { %v1570_v46 = vadd.f32 %v3337_v40, %v4934_v39  ;;  %v3340_v51 = vadd.f32 %v3339_v44, %v3338_v5  ;;  %v1689_v35 = vpack.c.bf16 %v1667_v19, %v1666_v58 }
 0x298   :  { %v1636_v31 = vmul.f32 0.01, %v1570_v46  ;;  %v1573_v29 = vadd.f32 %v3340_v51, %v4936_v21  ;;  %3373 = vmatprep.subr.bf16.mxu0 %v1689_v35 }
 0x299   :  { %3374 = vmatpush3.bf16.msra.mxu0 %v4951_v18 }
 0x29a   :  { %v1637_v59 = vmul.f32 0.01, %v1573_v29  ;;  %v3341_v60 = vpop.f32.mrb[44].mxu1  ;;  %v1668_v0 = vmax.f32 %v1570_v46, %v1636_v31 }
 0x29b   :  { %v3342_v15 = vpop.f32.mrb[45].mxu1 }
 0x29c   :  { %v1669_v61 = vmax.f32 %v1573_v29, %v1637_v59  ;;  %v3343_v42 = vadd.f32 %v3342_v15, %v3341_v60  ;;  %v3344_v62 = vpop.f32.mrb[46].mxu1 }
 0x29d   :  { %v3345_v41 = vpop.f32.mrb[47].mxu1 }
 0x29e   :  { %v1578_v3 = vadd.f32 %v3343_v42, %v4938_v52  ;;  %v3346_v6 = vadd.f32 %v3345_v41, %v3344_v62  ;;  %v1690_v39 = vpack.c.bf16 %v1669_v61, %v1668_v0 }
 0x2a0   :  { %v1638_v56 = vmul.f32 0.01, %v1578_v3  ;;  %v1581_v36 = vadd.f32 %v3346_v6, %v4940_v57  ;;  %3375 = vmatprep.subr.bf16.mxu0 %v1690_v39  ;;  %v3852_v6 = vld [vmem:[%s5356_s7] ss:$8 sps:$4 sm:$0xff]   ;;  %v3861_v39 = vld [vmem:[%s5356_s7 + $0x34] ss:$8 sps:$4 sm:$0xff]  }
 0x2a1   :  { %3376 = vmatpush3.bf16.msra.mxu0 %v4953_v9 }
 0x2a2   :  { %v1639_v21 = vmul.f32 0.01, %v1581_v36  ;;  %v3347_v18 = vpop.f32.mrb[48].mxu1  ;;  %v1670_v2 = vmax.f32 %v1578_v3, %v1638_v56  ;;  %v3863_v56 = vld [vmem:[%s5356_s7 + $0x30] ss:$8 sps:$4 sm:$0xff]  }
 0x2a3   :  { %v3348_v50 = vpop.f32.mrb[49].mxu1 }
 0x2a4   :  { %v1671_v7 = vmax.f32 %v1581_v36, %v1639_v21  ;;  %v3349_v43 = vadd.f32 %v3348_v50, %v3347_v18  ;;  %v3350_v12 = vpop.f32.mrb[50].mxu1  ;;  %v3864_v36 = vld [vmem:[%s5356_s7 + $0x44] ss:$8 sps:$4 sm:$0xff]   ;;  %v3866_v21 = vld [vmem:[%s5356_s7 + $0x40] ss:$8 sps:$4 sm:$0xff]  }
 0x2a5   :  { %v3351_v13 = vpop.f32.mrb[51].mxu1  ;;  %v3867_v18 = vld [vmem:[%s5356_s7 + $0x54] ss:$8 sps:$4 sm:$0xff]   ;;  %v3869_v50 = vld [vmem:[%s5356_s7 + $0x50] ss:$8 sps:$4 sm:$0xff]  }
 0x2a6   :  { %v1586_v16 = vadd.f32 %v3349_v43, %v4947_v10  ;;  %v3352_v17 = vadd.f32 %v3351_v13, %v3350_v12  ;;  %v1691_v52 = vpack.c.bf16 %v1671_v7, %v1670_v2  ;;  %v3870_v2 = vld [vmem:[%s5356_s7 + $0x64] ss:$8 sps:$4 sm:$0xff]   ;;  %v3872_v7 = vld [vmem:[%s5356_s7 + $0x60] ss:$8 sps:$4 sm:$0xff]   ;;  %v3873_v43 = vld [vmem:[%s5356_s7 + $0x74] ss:$8 sps:$4 sm:$0xff]  }
 0x2a7   :  { %v3875_v12 = vld [vmem:[%s5356_s7 + $0x70] ss:$8 sps:$4 sm:$0xff]   ;;  %v3876_v13 = vld [vmem:[%s5356_s7 + $0x84] ss:$8 sps:$4 sm:$0xff]  }
 0x2a8   :  { %v1640_v53 = vmul.f32 0.01, %v1586_v16  ;;  %v1589_v20 = vadd.f32 %v3352_v17, %v4949_v55  ;;  %3377 = vmatprep.subr.bf16.mxu0 %v1691_v52  ;;  %v3879_v17 = vld [vmem:[%s5356_s7 + $0x94] ss:$8 sps:$4 sm:$0xff]   ;;  %v3881_v52 = vld [vmem:[%s5356_s7 + $0x90] ss:$8 sps:$4 sm:$0xff]  }
 0x2a9   :  { %3378 = vmatpush3.bf16.msra.mxu0 %v4959_v4 }
 0x2aa   :  { %v1641_v57 = vmul.f32 0.01, %v1589_v20  ;;  %v3353_v9 = vpop.f32.mrb[52].mxu1  ;;  %v1672_v24 = vmax.f32 %v1586_v16, %v1640_v53  ;;  %v3878_v16 = vld [vmem:[%s5356_s7 + $0x80] ss:$8 sps:$4 sm:$0xff]  }
 0x2ab   :  { %v3354_v22 = vpop.f32.mrb[53].mxu1  ;;  %v3882_v53 = vld [vmem:[%s5356_s7 + $0xa4] ss:$8 sps:$4 sm:$0xff]  }
 0x2ac   :  { %v1673_v23 = vmax.f32 %v1589_v20, %v1641_v57  ;;  %v3355_v1 = vadd.f32 %v3354_v22, %v3353_v9  ;;  %v3356_v26 = vpop.f32.mrb[54].mxu1  ;;  %v3884_v20 = vld [vmem:[%s5356_s7 + $0xa0] ss:$8 sps:$4 sm:$0xff]   ;;  %v3885_v57 = vld [vmem:[%s5356_s7 + $0xb4] ss:$8 sps:$4 sm:$0xff]  }
 0x2ad   :  { %v3357_v63 = vpop.f32.mrb[55].mxu1  ;;  %v3887_v9 = vld [vmem:[%s5356_s7 + $0xb0] ss:$8 sps:$4 sm:$0xff]   ;;  %v3888_v22 = vld [vmem:[%s5356_s7 + $0xc4] ss:$8 sps:$4 sm:$0xff]  }
 0x2ae   :  { %v1594_v27 = vadd.f32 %v3355_v1, %v4955_v38  ;;  %v3358_v28 = vadd.f32 %v3357_v63, %v3356_v26  ;;  %v1692_v10 = vpack.c.bf16 %v1673_v23, %v1672_v24  ;;  %v3890_v24 = vld [vmem:[%s5356_s7 + $0xc0] ss:$8 sps:$4 sm:$0xff]   ;;  %v3891_v23 = vld [vmem:[%s5356_s7 + $0xd4] ss:$8 sps:$4 sm:$0xff]   ;;  %v3893_v1 = vld [vmem:[%s5356_s7 + $0xd0] ss:$8 sps:$4 sm:$0xff]  }
 0x2af   :  { %v3894_v26 = vld [vmem:[%s5356_s7 + $0xe4] ss:$8 sps:$4 sm:$0xff]   ;;  %v3896_v63 = vld [vmem:[%s5356_s7 + $0xe0] ss:$8 sps:$4 sm:$0xff]  }
 0x2b0   :  { %v1642_v49 = vmul.f32 0.01, %v1594_v27  ;;  %v1597_v45 = vadd.f32 %v3358_v28, %v4957_v47  ;;  %3379 = vmatprep.subr.bf16.mxu0 %v1692_v10  ;;  %v3899_v28 = vld [vmem:[%s5356_s7 + $0xf0] ss:$8 sps:$4 sm:$0xff]   ;;  %v5094_v10 = vpop.permute.xlu0 %1842 }
 0x2b1   :  { %3380 = vmatpush3.bf16.msra.mxu0 %v4965_v14 }
 0x2b2   :  { %v1643_v55 = vmul.f32 0.01, %v1597_v45  ;;  %v3359_v4 = vpop.f32.mrb[56].mxu1  ;;  %v1674_v34 = vmax.f32 %v1594_v27, %v1642_v49  ;;  %v3897_v27 = vld [vmem:[%s5356_s7 + $0xf4] ss:$8 sps:$4 sm:$0xff]   ;;  %v5096_v49 = vpop.permute.xlu1 %1847 }
 0x2b3   :  { %v3360_v11 = vpop.f32.mrb[57].mxu1 }
 0x2b4   :  { %v1675_v33 = vmax.f32 %v1597_v45, %v1643_v55  ;;  %v3361_v58 = vadd.f32 %v3360_v11, %v3359_v4  ;;  %v3362_v19 = vpop.f32.mrb[58].mxu1  ;;  %v1763_v45 = vpop.permute.xlu0 %1762 }
 0x2b5   :  { %v3363_v40 = vpop.f32.mrb[59].mxu1 }
 0x2b6   :  { %v1602_v5 = vadd.f32 %v3361_v58, %v4961_v25  ;;  %v3364_v44 = vadd.f32 %v3363_v40, %v3362_v19  ;;  %v1693_v38 = vpack.c.bf16 %v1675_v33, %v1674_v34  ;;  %v1768_v55 = vpop.permute.xlu1 %1767 }
 0x2b8   :  { %v1644_v46 = vmul.f32 0.01, %v1602_v5  ;;  %v1605_v51 = vadd.f32 %v3364_v44, %v4963_v8  ;;  %3381 = vmatprep.subr.bf16.mxu0 %v1693_v38  ;;  %v5098_v4 = vpop.permute.xlu0 %1852 }
 0x2b9   :  { %3382 = vmatpush3.bf16.msra.mxu0 %v4967_v30 }
 0x2ba   :  { %v1645_v47 = vmul.f32 0.01, %v1605_v51  ;;  %v3365_v14 = vpop.f32.mrb[60].mxu1  ;;  %v1676_v31 = vmax.f32 %v1602_v5, %v1644_v46  ;;  %v5100_v11 = vpop.permute.xlu1 %1857 }
 0x2bb   :  { %v3366_v35 = vpop.f32.mrb[61].mxu1 }
 0x2bc   :  { %v1677_v29 = vmax.f32 %v1605_v51, %v1645_v47  ;;  %v3367_v59 = vadd.f32 %v3366_v35, %v3365_v14  ;;  %v3368_v60 = vpop.f32.mrb[62].mxu1  ;;  %v1773_v34 = vpop.permute.xlu0 %1772 }
 0x2bd   :  { %v3369_v15 = vpop.f32.mrb[63].mxu1 }
 0x2be   :  { %v1610_v0 = vadd.f32 %v3367_v59, %v4969_v32  ;;  %v3370_v61 = vadd.f32 %v3369_v15, %v3368_v60  ;;  %v1694_v25 = vpack.c.bf16 %v1677_v29, %v1676_v31  ;;  %v3855_v32 = vld [vmem:[%s5356_s7 + $0x14] ss:$8 sps:$4 sm:$0xff]   ;;  %v1778_v33 = vpop.permute.xlu1 %1777 }
 0x2c0   :  { %v1646_v42 = vmul.f32 0.01, %v1610_v0  ;;  %v1613_v62 = vadd.f32 %v3370_v61, %v4971_v37  ;;  %3383 = vmatprep.subr.bf16.mxu0 %v1694_v25  ;;  %v3857_v37 = vld [vmem:[%s5356_s7 + $0x10] ss:$8 sps:$4 sm:$0xff]   ;;  %v5102_v58 = vpop.permute.xlu0 %1862  ;;  %v3902_v61 = vld [vmem:[%s5357_s9 + $0x4] ss:$8 sps:$4 sm:$0xff]  }
 0x2c1   :  { %3384 = vmatpush3.bf16.msra.mxu0 %v4973_v54  ;;  %v3858_v54 = vld [vmem:[%s5356_s7 + $0x24] ss:$8 sps:$4 sm:$0xff]   ;;  %2737 = vmatprep.mubr.bf16.mxu1 %v3902_v61 }
 0x2c2   :  { %v1647_v8 = vmul.f32 0.01, %v1613_v62  ;;  %v1678_v30 = vmax.f32 %v1610_v0, %v1646_v42  ;;  %v5104_v19 = vpop.permute.xlu1 %1867 }
 0x2c4   :  { %v1679_v41 = vmax.f32 %v1613_v62, %v1647_v8  ;;  %v1783_v40 = vpop.permute.xlu0 %1782 }
 0x2c6   :  { %v1695_v3 = vpack.c.bf16 %v1679_v41, %v1678_v30  ;;  %v1788_v44 = vpop.permute.xlu1 %1787 }
 0x2c8   :  { %3385 = vmatprep.subr.bf16.mxu0 %v1695_v3  ;;  %v5106_v31 = vpop.permute.xlu0 %1872 }
 0x2c9   :  { %3386 = vmatpush3.bf16.msra.mxu0 %v4975_v48  ;;  %v3860_v48 = vld [vmem:[%s5356_s7 + $0x20] ss:$8 sps:$4 sm:$0xff]  }
 0x2ca   :  { %v5108_v60 = vpop.permute.xlu1 %1877 }
 0x2cc   :  { %2113 = vmatmul.mubr.bf16.vlgmr.msra.gmra.mrb[32].mxu0 %v3852_v6  ;;  %v1793_v41 = vpop.permute.xlu0 %1792 }
 0x2cd   :  { %2120 = vmatprep.mubr.bf16.mxu0 %v3855_v32 }
 0x2d4   :  { %2121 = vmatmul.mubr.bf16.gmra.mrb[36].mxu0 %v3857_v37 }
 0x2d5   :  { %2128 = vmatprep.mubr.bf16.mxu0 %v3858_v54  ;;  %v1798_v54 = vpop.permute.xlu1 %1797 }
 0x2dc   :  { %2129 = vmatmul.mubr.bf16.gmra.mrb[40].mxu0 %v3860_v48 }
 0x2dd   :  { %2136 = vmatprep.mubr.bf16.mxu0 %v3861_v39 }
 0x2e4   :  { %2137 = vmatmul.mubr.bf16.gmra.mrb[44].mxu0 %v3863_v56 }
 0x2e5   :  { %2144 = vmatprep.mubr.bf16.mxu0 %v3864_v36 }
 0x2ec   :  { %2145 = vmatmul.mubr.bf16.gmra.mrb[48].mxu0 %v3866_v21  ;;  %v5115_v21 = vpop.permute.xlu0 %1882 }
 0x2ed   :  { %2152 = vmatprep.mubr.bf16.mxu0 %v3867_v18 }
 0x2f4   :  { %2153 = vmatmul.mubr.bf16.gmra.mrb[52].mxu0 %v3869_v50 }
 0x2f5   :  { %2160 = vmatprep.mubr.bf16.mxu0 %v3870_v2 }
 0x2fc   :  { %2161 = vmatmul.mubr.bf16.gmra.mrb[56].mxu0 %v3872_v7 }
 0x2fd   :  { %2168 = vmatprep.mubr.bf16.mxu0 %v3873_v43 }
 0x304   :  { %2169 = vmatmul.mubr.bf16.gmra.mrb[60].mxu0 %v3875_v12  ;;  %v5117_v12 = vpop.permute.xlu1 %1887 }
 0x305   :  { %2176 = vmatprep.mubr.bf16.mxu0 %v3876_v13 }
 0x30c   :  { %2177 = vmatmul.mubr.bf16.gmra.mrb[64].mxu0 %v3878_v16 }
 0x30d   :  { %2184 = vmatprep.mubr.bf16.mxu0 %v3879_v17 }
 0x314   :  { %2185 = vmatmul.mubr.bf16.gmra.mrb[68].mxu0 %v3881_v52 }
 0x315   :  { %2192 = vmatprep.mubr.bf16.mxu0 %v3882_v53 }
 0x31c   :  { %2193 = vmatmul.mubr.bf16.gmra.mrb[72].mxu0 %v3884_v20 }
 0x31d   :  { %2200 = vmatprep.mubr.bf16.mxu0 %v3885_v57  ;;  %v1803_v57 = vpop.permute.xlu0 %1802 }
 0x324   :  { %2201 = vmatmul.mubr.bf16.gmra.mrb[76].mxu0 %v3887_v9 }
 0x325   :  { %2208 = vmatprep.mubr.bf16.mxu0 %v3888_v22 }
 0x32c   :  { %2209 = vmatmul.mubr.bf16.gmra.mrb[80].mxu0 %v3890_v24  ;;  %v1808_v24 = vpop.permute.xlu1 %1807 }
 0x32d   :  { %2216 = vmatprep.mubr.bf16.mxu0 %v3891_v23 }
 0x334   :  { %2217 = vmatmul.mubr.bf16.gmra.mrb[84].mxu0 %v3893_v1 }
 0x335   :  { %2224 = vmatprep.mubr.bf16.mxu0 %v3894_v26 }
 0x33c   :  { %2225 = vmatmul.mubr.bf16.gmra.mrb[88].mxu0 %v3896_v63 }
 0x33d   :  { %2232 = vmatprep.mubr.bf16.mxu0 %v3897_v27 }
 0x344   :  { %2233 = vmatmul.mubr.bf16.gmra.mrb[92].mxu0 %v3899_v28 }
 0x39f   :  { %v3387_v5 = vpop.f32.mrb[32].mxu0 }
 0x3a0   :  { %v3388_v38 = vpop.f32.mrb[33].mxu0 }
 0x3a1   :  { %v3389_v46 = vadd.f32 %v3388_v38, %v3387_v5  ;;  %v3390_v51 = vpop.f32.mrb[34].mxu0  ;;  %v5125_v38 = vpop.permute.xlu1 %1897 }
 0x3a2   :  { %v3391_v47 = vpop.f32.mrb[35].mxu0 }
 0x3a3   :  { %v2115_v14 = vadd.f32 %v3389_v46, %v1763_v45  ;;  %v3392_v35 = vadd.f32 %v3391_v47, %v3390_v51 }
 0x3a5   :  { %v2241_v29 = vmul.f32 0.01, %v2115_v14  ;;  %v2118_v59 = vadd.f32 %v3392_v35, %v1768_v55 }
 0x3a7   :  { %v2242_v15 = vmul.f32 0.01, %v2118_v59  ;;  %v3393_v0 = vpop.f32.mrb[36].mxu0  ;;  %v2273_v42 = vmax.f32 %v2115_v14, %v2241_v29 }
 0x3a8   :  { %v3394_v25 = vpop.f32.mrb[37].mxu0 }
 0x3a9   :  { %v2274_v62 = vmax.f32 %v2118_v59, %v2242_v15  ;;  %v3395_v8 = vadd.f32 %v3394_v25, %v3393_v0  ;;  %v3396_v30 = vpop.f32.mrb[38].mxu0 }
 0x3aa   :  { %v3397_v3 = vpop.f32.mrb[39].mxu0 }
 0x3ab   :  { %v5113_v6 = vpack.c.bf16 %v2274_v62, %v2273_v42  ;;  %v2123_v32 = vadd.f32 %v3395_v8, %v1773_v34  ;;  %v3398_v37 = vadd.f32 %v3397_v3, %v3396_v30  ;;  %v1818_v42 = vpop.permute.xlu1 %1817 }
 0x3ad   :  { %v2243_v48 = vmul.f32 0.01, %v2123_v32  ;;  %v2126_v39 = vadd.f32 %v3398_v37, %v1778_v33  ;;  %v5123_v33 = vpop.permute.xlu0 %1892 }
 0x3af   :  { %v2244_v56 = vmul.f32 0.01, %v2126_v39  ;;  %v3399_v36 = vpop.f32.mrb[40].mxu0  ;;  %v2275_v50 = vmax.f32 %v2123_v32, %v2243_v48 }
 0x3b0   :  { %v3400_v18 = vpop.f32.mrb[41].mxu0 }
 0x3b1   :  { %v2276_v2 = vmax.f32 %v2126_v39, %v2244_v56  ;;  %v3401_v7 = vadd.f32 %v3400_v18, %v3399_v36  ;;  %v3402_v43 = vpop.f32.mrb[42].mxu0  ;;  %v1813_v59 = vpop.permute.xlu0 %1812 }
 0x3b2   :  { %v3403_v13 = vpop.f32.mrb[43].mxu0  ;;  %v5131_v56 = vpop.permute.xlu1 %1907 }
 0x3b3   :  { %v5119_v16 = vpack.c.bf16 %v2276_v2, %v2275_v50  ;;  %v2131_v17 = vadd.f32 %v3401_v7, %v1783_v40  ;;  %v3404_v52 = vadd.f32 %v3403_v13, %v3402_v43 }
 0x3b5   :  { %v2245_v53 = vmul.f32 0.01, %v2131_v17  ;;  %v2134_v20 = vadd.f32 %v3404_v52, %v1788_v44  ;;  %v5129_v3 = vpop.permute.xlu0 %1902 }
 0x3b7   :  { %v2246_v9 = vmul.f32 0.01, %v2134_v20  ;;  %v3405_v22 = vpop.f32.mrb[44].mxu0  ;;  %v2277_v1 = vmax.f32 %v2131_v17, %v2245_v53  ;;  %v1828_v53 = vpop.permute.xlu1 %1827 }
 0x3b8   :  { %v3406_v23 = vpop.f32.mrb[45].mxu0 }
 0x3b9   :  { %v2278_v26 = vmax.f32 %v2134_v20, %v2246_v9  ;;  %v3407_v63 = vadd.f32 %v3406_v23, %v3405_v22  ;;  %v3408_v27 = vpop.f32.mrb[46].mxu0  ;;  %v1823_v13 = vpop.permute.xlu0 %1822 }
 0x3ba   :  { %v3409_v28 = vpop.f32.mrb[47].mxu0 }
 0x3bb   :  { %v5121_v45 = vpack.c.bf16 %v2278_v26, %v2277_v1  ;;  %v2139_v55 = vadd.f32 %v3407_v63, %v1793_v41  ;;  %v3410_v34 = vadd.f32 %v3409_v28, %v3408_v27 }
 0x3bd   :  { %v2247_v40 = vmul.f32 0.01, %v2139_v55  ;;  %v2142_v5 = vadd.f32 %v3410_v34, %v1798_v54  ;;  %v5137_v27 = vpop.permute.xlu0 %1912  ;;  %v5139_v34 = vpop.permute.xlu1 %1917 }
 0x3bf   :  { %v2248_v44 = vmul.f32 0.01, %v2142_v5  ;;  %v3411_v46 = vpop.f32.mrb[48].mxu0  ;;  %v2279_v47 = vmax.f32 %v2139_v55, %v2247_v40 }
 0x3c0   :  { %v3412_v51 = vpop.f32.mrb[49].mxu0 }
 0x3c1   :  { %v2280_v14 = vmax.f32 %v2142_v5, %v2248_v44  ;;  %v3413_v35 = vadd.f32 %v3412_v51, %v3411_v46  ;;  %v3414_v29 = vpop.f32.mrb[50].mxu0 }
 0x3c2   :  { %v3415_v15 = vpop.f32.mrb[51].mxu0 }
 0x3c3   :  { %v5127_v0 = vpack.c.bf16 %v2280_v14, %v2279_v47  ;;  %v2147_v61 = vadd.f32 %v3413_v35, %v1803_v57  ;;  %v3416_v25 = vadd.f32 %v3415_v15, %v3414_v29  ;;  %v1833_v35 = vpop.permute.xlu0 %1832 }
 0x3c5   :  { %v2249_v62 = vmul.f32 0.01, %v2147_v61  ;;  %v2150_v8 = vadd.f32 %v3416_v25, %v1808_v24  ;;  %v1838_v25 = vpop.permute.xlu1 %1837 }
 0x3c7   :  { %v2250_v30 = vmul.f32 0.01, %v2150_v8  ;;  %v3417_v41 = vpop.f32.mrb[52].mxu0  ;;  %v2281_v37 = vmax.f32 %v2147_v61, %v2249_v62 }
 0x3c8   :  { %v3418_v32 = vpop.f32.mrb[53].mxu0 }
 0x3c9   :  { %v2282_v54 = vmax.f32 %v2150_v8, %v2250_v30  ;;  %v3419_v48 = vadd.f32 %v3418_v32, %v3417_v41  ;;  %v3420_v39 = vpop.f32.mrb[54].mxu0 }
 0x3ca   :  { %v3421_v36 = vpop.f32.mrb[55].mxu0 }
 0x3cb   :  { %v5133_v18 = vpack.c.bf16 %v2282_v54, %v2281_v37  ;;  %v2155_v50 = vadd.f32 %v3419_v48, %v1813_v59  ;;  %v3422_v2 = vadd.f32 %v3421_v36, %v3420_v39 }
 0x3cd   :  { %v2251_v7 = vmul.f32 0.01, %v2155_v50  ;;  %v2158_v43 = vadd.f32 %v3422_v2, %v1818_v42 }
 0x3cf   :  { %v2252_v17 = vmul.f32 0.01, %v2158_v43  ;;  %v3423_v52 = vpop.f32.mrb[56].mxu0  ;;  %v2283_v57 = vmax.f32 %v2155_v50, %v2251_v7 }
 0x3d0   :  { %v3424_v20 = vpop.f32.mrb[57].mxu0 }
 0x3d1   :  { %v2284_v9 = vmax.f32 %v2158_v43, %v2252_v17  ;;  %v3425_v22 = vadd.f32 %v3424_v20, %v3423_v52  ;;  %v3426_v24 = vpop.f32.mrb[58].mxu0 }
 0x3d2   :  { %v3427_v23 = vpop.f32.mrb[59].mxu0 }
 0x3d3   :  { %v5135_v1 = vpack.c.bf16 %v2284_v9, %v2283_v57  ;;  %v2163_v26 = vadd.f32 %v3425_v22, %v1823_v13  ;;  %v3428_v63 = vadd.f32 %v3427_v23, %v3426_v24 }
 0x3d5   :  { %v2253_v28 = vmul.f32 0.01, %v2163_v26  ;;  %v2166_v55 = vadd.f32 %v3428_v63, %v1828_v53 }
 0x3d7   :  { %v2254_v40 = vmul.f32 0.01, %v2166_v55  ;;  %v3429_v5 = vpop.f32.mrb[60].mxu0  ;;  %v2285_v46 = vmax.f32 %v2163_v26, %v2253_v28 }
 0x3d8   :  { %v3430_v44 = vpop.f32.mrb[61].mxu0 }
 0x3d9   :  { %v2286_v51 = vmax.f32 %v2166_v55, %v2254_v40  ;;  %v3431_v47 = vadd.f32 %v3430_v44, %v3429_v5  ;;  %v3432_v14 = vpop.f32.mrb[62].mxu0 }
 0x3da   :  { %v3433_v29 = vpop.f32.mrb[63].mxu0 }
 0x3db   :  { %v5141_v59 = vpack.c.bf16 %v2286_v51, %v2285_v46  ;;  %v2171_v15 = vadd.f32 %v3431_v47, %v1833_v35  ;;  %v3434_v61 = vadd.f32 %v3433_v29, %v3432_v14 }
 0x3dd   :  { %v2255_v42 = vmul.f32 0.01, %v2171_v15  ;;  %v2174_v62 = vadd.f32 %v3434_v61, %v1838_v25 }
 0x3df   :  { %v2256_v8 = vmul.f32 0.01, %v2174_v62  ;;  %v3435_v30 = vpop.f32.mrb[64].mxu0  ;;  %v2287_v32 = vmax.f32 %v2171_v15, %v2255_v42 }
 0x3e0   :  { %v3436_v41 = vpop.f32.mrb[65].mxu0 }
 0x3e1   :  { %v2288_v37 = vmax.f32 %v2174_v62, %v2256_v8  ;;  %v3437_v54 = vadd.f32 %v3436_v41, %v3435_v30  ;;  %v3438_v48 = vpop.f32.mrb[66].mxu0 }
 0x3e2   :  { %v3439_v39 = vpop.f32.mrb[67].mxu0 }
 0x3e3   :  { %v5143_v36 = vpack.c.bf16 %v2288_v37, %v2287_v32  ;;  %v2179_v50 = vadd.f32 %v3437_v54, %v5094_v10  ;;  %v3440_v2 = vadd.f32 %v3439_v39, %v3438_v48 }
 0x3e5   :  { %v2257_v7 = vmul.f32 0.01, %v2179_v50  ;;  %v2182_v43 = vadd.f32 %v3440_v2, %v5096_v49 }
 0x3e7   :  { %v2258_v13 = vmul.f32 0.01, %v2182_v43  ;;  %v3441_v17 = vpop.f32.mrb[68].mxu0  ;;  %v2289_v53 = vmax.f32 %v2179_v50, %v2257_v7 }
 0x3e8   :  { %v3442_v52 = vpop.f32.mrb[69].mxu0 }
 0x3e9   :  { %v2290_v20 = vmax.f32 %v2182_v43, %v2258_v13  ;;  %v3443_v57 = vadd.f32 %v3442_v52, %v3441_v17  ;;  %v3444_v9 = vpop.f32.mrb[70].mxu0 }
 0x3ea   :  { %v3445_v22 = vpop.f32.mrb[71].mxu0 }
 0x3eb   :  { %v2187_v24 = vadd.f32 %v3443_v57, %v5098_v4  ;;  %v3446_v23 = vadd.f32 %v3445_v22, %v3444_v9  ;;  %v2313_v26 = vpack.c.bf16 %v2290_v20, %v2289_v53 }
 0x3ed   :  { %v2259_v63 = vmul.f32 0.01, %v2187_v24  ;;  %v2190_v28 = vadd.f32 %v3446_v23, %v5100_v11  ;;  %3483 = vmatprep.subr.bf16.mxu1 %v2313_v26 }
 0x3ee   :  { %3484 = vmatpush3.bf16.msra.mxu1 %v5113_v6 }
 0x3ef   :  { %v2260_v10 = vmul.f32 0.01, %v2190_v28  ;;  %v3447_v49 = vpop.f32.mrb[72].mxu0  ;;  %v2291_v40 = vmax.f32 %v2187_v24, %v2259_v63 }
 0x3f0   :  { %v3448_v55 = vpop.f32.mrb[73].mxu0 }
 0x3f1   :  { %v2292_v5 = vmax.f32 %v2190_v28, %v2260_v10  ;;  %v3449_v44 = vadd.f32 %v3448_v55, %v3447_v49  ;;  %v3450_v46 = vpop.f32.mrb[74].mxu0 }
 0x3f2   :  { %v3451_v51 = vpop.f32.mrb[75].mxu0 }
 0x3f3   :  { %v2195_v47 = vadd.f32 %v3449_v44, %v5102_v58  ;;  %v3452_v14 = vadd.f32 %v3451_v51, %v3450_v46  ;;  %v2314_v4 = vpack.c.bf16 %v2292_v5, %v2291_v40 }
 0x3f5   :  { %v2261_v35 = vmul.f32 0.01, %v2195_v47  ;;  %v2198_v29 = vadd.f32 %v3452_v14, %v5104_v19  ;;  %3485 = vmatprep.subr.bf16.mxu1 %v2314_v4 }
 0x3f6   :  { %3486 = vmatpush3.bf16.msra.mxu1 %v5119_v16 }
 0x3f7   :  { %v2262_v11 = vmul.f32 0.01, %v2198_v29  ;;  %v3453_v6 = vpop.f32.mrb[76].mxu0  ;;  %v2293_v61 = vmax.f32 %v2195_v47, %v2261_v35 }
 0x3f8   :  { %v3454_v15 = vpop.f32.mrb[77].mxu0 }
 0x3f9   :  { %v2294_v25 = vmax.f32 %v2198_v29, %v2262_v11  ;;  %v3455_v42 = vadd.f32 %v3454_v15, %v3453_v6  ;;  %v3456_v62 = vpop.f32.mrb[78].mxu0 }
 0x3fa   :  { %v3457_v8 = vpop.f32.mrb[79].mxu0 }
 0x3fb   :  { %v2203_v30 = vadd.f32 %v3455_v42, %v5106_v31  ;;  %v3458_v41 = vadd.f32 %v3457_v8, %v3456_v62  ;;  %v2315_v58 = vpack.c.bf16 %v2294_v25, %v2293_v61 }
 0x3fd   :  { %v2263_v32 = vmul.f32 0.01, %v2203_v30  ;;  %v2206_v37 = vadd.f32 %v3458_v41, %v5108_v60  ;;  %3487 = vmatprep.subr.bf16.mxu1 %v2315_v58  ;;  %v3900_v41 = vld [vmem:[%s5357_s9] ss:$8 sps:$4 sm:$0xff]   ;;  %v3909_v58 = vld [vmem:[%s5357_s9 + $0x34] ss:$8 sps:$4 sm:$0xff]  }
 0x3fe   :  { %3488 = vmatpush3.bf16.msra.mxu1 %v5121_v45 }
 0x3ff   :  { %v2264_v19 = vmul.f32 0.01, %v2206_v37  ;;  %v3459_v16 = vpop.f32.mrb[80].mxu0  ;;  %v2295_v48 = vmax.f32 %v2203_v30, %v2263_v32  ;;  %v3911_v32 = vld [vmem:[%s5357_s9 + $0x30] ss:$8 sps:$4 sm:$0xff]  }
 0x400   :  { %v3460_v54 = vpop.f32.mrb[81].mxu0 }
 0x401   :  { %v2296_v39 = vmax.f32 %v2206_v37, %v2264_v19  ;;  %v3461_v50 = vadd.f32 %v3460_v54, %v3459_v16  ;;  %v3462_v2 = vpop.f32.mrb[82].mxu0  ;;  %v3912_v37 = vld [vmem:[%s5357_s9 + $0x44] ss:$8 sps:$4 sm:$0xff]   ;;  %v3914_v19 = vld [vmem:[%s5357_s9 + $0x40] ss:$8 sps:$4 sm:$0xff]  }
 0x402   :  { %v3463_v7 = vpop.f32.mrb[83].mxu0  ;;  %v3915_v16 = vld [vmem:[%s5357_s9 + $0x54] ss:$8 sps:$4 sm:$0xff]   ;;  %v3917_v54 = vld [vmem:[%s5357_s9 + $0x50] ss:$8 sps:$4 sm:$0xff]  }
 0x403   :  { %v2211_v43 = vadd.f32 %v3461_v50, %v5115_v21  ;;  %v3464_v13 = vadd.f32 %v3463_v7, %v3462_v2  ;;  %v2316_v31 = vpack.c.bf16 %v2296_v39, %v2295_v48  ;;  %v3918_v48 = vld [vmem:[%s5357_s9 + $0x64] ss:$8 sps:$4 sm:$0xff]   ;;  %v3920_v39 = vld [vmem:[%s5357_s9 + $0x60] ss:$8 sps:$4 sm:$0xff]   ;;  %v3921_v50 = vld [vmem:[%s5357_s9 + $0x74] ss:$8 sps:$4 sm:$0xff]  }
 0x404   :  { %v3923_v2 = vld [vmem:[%s5357_s9 + $0x70] ss:$8 sps:$4 sm:$0xff]   ;;  %v3924_v7 = vld [vmem:[%s5357_s9 + $0x84] ss:$8 sps:$4 sm:$0xff]  }
 0x405   :  { %v2265_v17 = vmul.f32 0.01, %v2211_v43  ;;  %v2214_v52 = vadd.f32 %v3464_v13, %v5117_v12  ;;  %3489 = vmatprep.subr.bf16.mxu1 %v2316_v31  ;;  %v3927_v13 = vld [vmem:[%s5357_s9 + $0x94] ss:$8 sps:$4 sm:$0xff]   ;;  %v3929_v31 = vld [vmem:[%s5357_s9 + $0x90] ss:$8 sps:$4 sm:$0xff]  }
 0x406   :  { %3490 = vmatpush3.bf16.msra.mxu1 %v5127_v0 }
 0x407   :  { %v2266_v60 = vmul.f32 0.01, %v2214_v52  ;;  %v3465_v45 = vpop.f32.mrb[84].mxu0  ;;  %v2297_v20 = vmax.f32 %v2211_v43, %v2265_v17  ;;  %v3926_v43 = vld [vmem:[%s5357_s9 + $0x80] ss:$8 sps:$4 sm:$0xff]  }
 0x408   :  { %v3466_v53 = vpop.f32.mrb[85].mxu0  ;;  %v3930_v17 = vld [vmem:[%s5357_s9 + $0xa4] ss:$8 sps:$4 sm:$0xff]  }
 0x409   :  { %v2298_v57 = vmax.f32 %v2214_v52, %v2266_v60  ;;  %v3467_v9 = vadd.f32 %v3466_v53, %v3465_v45  ;;  %v3468_v22 = vpop.f32.mrb[86].mxu0  ;;  %v3932_v52 = vld [vmem:[%s5357_s9 + $0xa0] ss:$8 sps:$4 sm:$0xff]   ;;  %v3933_v60 = vld [vmem:[%s5357_s9 + $0xb4] ss:$8 sps:$4 sm:$0xff]  }
 0x40a   :  { %v3469_v24 = vpop.f32.mrb[87].mxu0  ;;  %v3935_v45 = vld [vmem:[%s5357_s9 + $0xb0] ss:$8 sps:$4 sm:$0xff]   ;;  %v3936_v53 = vld [vmem:[%s5357_s9 + $0xc4] ss:$8 sps:$4 sm:$0xff]  }
 0x40b   :  { %v2219_v23 = vadd.f32 %v3467_v9, %v5123_v33  ;;  %v3470_v26 = vadd.f32 %v3469_v24, %v3468_v22  ;;  %v2317_v21 = vpack.c.bf16 %v2298_v57, %v2297_v20  ;;  %v3938_v20 = vld [vmem:[%s5357_s9 + $0xc0] ss:$8 sps:$4 sm:$0xff]   ;;  %v3939_v57 = vld [vmem:[%s5357_s9 + $0xd4] ss:$8 sps:$4 sm:$0xff]   ;;  %v3941_v9 = vld [vmem:[%s5357_s9 + $0xd0] ss:$8 sps:$4 sm:$0xff]  }
 0x40c   :  { %v3942_v22 = vld [vmem:[%s5357_s9 + $0xe4] ss:$8 sps:$4 sm:$0xff]   ;;  %v3944_v24 = vld [vmem:[%s5357_s9 + $0xe0] ss:$8 sps:$4 sm:$0xff]  }
 0x40d   :  { %v2267_v63 = vmul.f32 0.01, %v2219_v23  ;;  %v2222_v28 = vadd.f32 %v3470_v26, %v5125_v38  ;;  %3491 = vmatprep.subr.bf16.mxu1 %v2317_v21  ;;  %v3947_v26 = vld [vmem:[%s5357_s9 + $0xf0] ss:$8 sps:$4 sm:$0xff]   ;;  %v5262_v21 = vpop.permute.xlu0 %2467 }
 0x40e   :  { %3492 = vmatpush3.bf16.msra.mxu1 %v5133_v18 }
 0x40f   :  { %v2268_v12 = vmul.f32 0.01, %v2222_v28  ;;  %v3471_v0 = vpop.f32.mrb[88].mxu0  ;;  %v2299_v49 = vmax.f32 %v2219_v23, %v2267_v63  ;;  %v3945_v23 = vld [vmem:[%s5357_s9 + $0xf4] ss:$8 sps:$4 sm:$0xff]   ;;  %v5264_v63 = vpop.permute.xlu1 %2472 }
 0x410   :  { %v3472_v10 = vpop.f32.mrb[89].mxu0 }
 0x411   :  { %v2300_v55 = vmax.f32 %v2222_v28, %v2268_v12  ;;  %v3473_v40 = vadd.f32 %v3472_v10, %v3471_v0  ;;  %v3474_v5 = vpop.f32.mrb[90].mxu0  ;;  %v2388_v28 = vpop.permute.xlu0 %2387 }
 0x412   :  { %v3475_v44 = vpop.f32.mrb[91].mxu0 }
 0x413   :  { %v2227_v46 = vadd.f32 %v3473_v40, %v5129_v3  ;;  %v3476_v51 = vadd.f32 %v3475_v44, %v3474_v5  ;;  %v2318_v33 = vpack.c.bf16 %v2300_v55, %v2299_v49  ;;  %v2393_v12 = vpop.permute.xlu1 %2392 }
 0x415   :  { %v2269_v47 = vmul.f32 0.01, %v2227_v46  ;;  %v2230_v14 = vadd.f32 %v3476_v51, %v5131_v56  ;;  %3493 = vmatprep.subr.bf16.mxu1 %v2318_v33  ;;  %v5266_v0 = vpop.permute.xlu0 %2477 }
 0x416   :  { %3494 = vmatpush3.bf16.msra.mxu1 %v5135_v1 }
 0x417   :  { %v2270_v38 = vmul.f32 0.01, %v2230_v14  ;;  %v3477_v18 = vpop.f32.mrb[92].mxu0  ;;  %v2301_v35 = vmax.f32 %v2227_v46, %v2269_v47  ;;  %v5268_v10 = vpop.permute.xlu1 %2482 }
 0x418   :  { %v3478_v4 = vpop.f32.mrb[93].mxu0 }
 0x419   :  { %v2302_v29 = vmax.f32 %v2230_v14, %v2270_v38  ;;  %v3479_v11 = vadd.f32 %v3478_v4, %v3477_v18  ;;  %v3480_v6 = vpop.f32.mrb[94].mxu0  ;;  %v2398_v49 = vpop.permute.xlu0 %2397 }
 0x41a   :  { %v3481_v15 = vpop.f32.mrb[95].mxu0 }
 0x41b   :  { %v2235_v61 = vadd.f32 %v3479_v11, %v5137_v27  ;;  %v3482_v25 = vadd.f32 %v3481_v15, %v3480_v6  ;;  %v2319_v3 = vpack.c.bf16 %v2302_v29, %v2301_v35  ;;  %v3903_v27 = vld [vmem:[%s5357_s9 + $0x14] ss:$8 sps:$4 sm:$0xff]   ;;  %v2403_v55 = vpop.permute.xlu1 %2402 }
 0x41d   :  { %v2271_v42 = vmul.f32 0.01, %v2235_v61  ;;  %v2238_v62 = vadd.f32 %v3482_v25, %v5139_v34  ;;  %3495 = vmatprep.subr.bf16.mxu1 %v2319_v3  ;;  %v3905_v34 = vld [vmem:[%s5357_s9 + $0x10] ss:$8 sps:$4 sm:$0xff]   ;;  %v5270_v40 = vpop.permute.xlu0 %2487  ;;  %v3950_v25 = vld [vmem:[%s5358_s11 + $0x4] ss:$8 sps:$4 sm:$0xff]  }
 0x41e   :  { %3496 = vmatpush3.bf16.msra.mxu1 %v5141_v59  ;;  %v3906_v59 = vld [vmem:[%s5357_s9 + $0x24] ss:$8 sps:$4 sm:$0xff]   ;;  %3002 = vmatprep.mubr.bf16.mxu0 %v3950_v25 }
 0x41f   :  { %v2272_v56 = vmul.f32 0.01, %v2238_v62  ;;  %v2303_v1 = vmax.f32 %v2235_v61, %v2271_v42  ;;  %v5272_v5 = vpop.permute.xlu1 %2492 }
 0x421   :  { %v2304_v8 = vmax.f32 %v2238_v62, %v2272_v56  ;;  %v2408_v44 = vpop.permute.xlu0 %2407 }
 0x423   :  { %v2320_v30 = vpack.c.bf16 %v2304_v8, %v2303_v1  ;;  %v2413_v51 = vpop.permute.xlu1 %2412 }
 0x425   :  { %3497 = vmatprep.subr.bf16.mxu1 %v2320_v30  ;;  %v5274_v35 = vpop.permute.xlu0 %2497 }
 0x426   :  { %3498 = vmatpush3.bf16.msra.mxu1 %v5143_v36  ;;  %v3908_v36 = vld [vmem:[%s5357_s9 + $0x20] ss:$8 sps:$4 sm:$0xff]  }
 0x427   :  { %v5276_v6 = vpop.permute.xlu1 %2502 }
 0x429   :  { %2738 = vmatmul.mubr.bf16.vlgmr.msra.gmra.mrb[64].mxu1 %v3900_v41  ;;  %v2418_v8 = vpop.permute.xlu0 %2417 }
 0x42a   :  { %2745 = vmatprep.mubr.bf16.mxu1 %v3903_v27 }
 0x431   :  { %2746 = vmatmul.mubr.bf16.gmra.mrb[68].mxu1 %v3905_v34 }
 0x432   :  { %2753 = vmatprep.mubr.bf16.mxu1 %v3906_v59  ;;  %v2423_v59 = vpop.permute.xlu1 %2422 }
 0x439   :  { %2754 = vmatmul.mubr.bf16.gmra.mrb[72].mxu1 %v3908_v36 }
 0x43a   :  { %2761 = vmatprep.mubr.bf16.mxu1 %v3909_v58 }
 0x441   :  { %2762 = vmatmul.mubr.bf16.gmra.mrb[76].mxu1 %v3911_v32 }
 0x442   :  { %2769 = vmatprep.mubr.bf16.mxu1 %v3912_v37 }
 0x449   :  { %2770 = vmatmul.mubr.bf16.gmra.mrb[80].mxu1 %v3914_v19  ;;  %v5283_v19 = vpop.permute.xlu0 %2507 }
 0x44a   :  { %2777 = vmatprep.mubr.bf16.mxu1 %v3915_v16 }
 0x451   :  { %2778 = vmatmul.mubr.bf16.gmra.mrb[84].mxu1 %v3917_v54 }
 0x452   :  { %2785 = vmatprep.mubr.bf16.mxu1 %v3918_v48 }
 0x459   :  { %2786 = vmatmul.mubr.bf16.gmra.mrb[88].mxu1 %v3920_v39 }
 0x45a   :  { %2793 = vmatprep.mubr.bf16.mxu1 %v3921_v50 }
 0x461   :  { %2794 = vmatmul.mubr.bf16.gmra.mrb[92].mxu1 %v3923_v2  ;;  %v5285_v2 = vpop.permute.xlu1 %2512 }
 0x462   :  { %2801 = vmatprep.mubr.bf16.mxu1 %v3924_v7 }
 0x469   :  { %2802 = vmatmul.mubr.bf16.gmra.mrb[96].mxu1 %v3926_v43 }
 0x46a   :  { %2809 = vmatprep.mubr.bf16.mxu1 %v3927_v13 }
 0x471   :  { %2810 = vmatmul.mubr.bf16.gmra.mrb[100].mxu1 %v3929_v31 }
 0x472   :  { %2817 = vmatprep.mubr.bf16.mxu1 %v3930_v17 }
 0x479   :  { %2818 = vmatmul.mubr.bf16.gmra.mrb[104].mxu1 %v3932_v52 }
 0x47a   :  { %2825 = vmatprep.mubr.bf16.mxu1 %v3933_v60  ;;  %v2428_v60 = vpop.permute.xlu0 %2427 }
 0x481   :  { %2826 = vmatmul.mubr.bf16.gmra.mrb[108].mxu1 %v3935_v45 }
 0x482   :  { %2833 = vmatprep.mubr.bf16.mxu1 %v3936_v53 }
 0x489   :  { %2834 = vmatmul.mubr.bf16.gmra.mrb[112].mxu1 %v3938_v20  ;;  %v2433_v20 = vpop.permute.xlu1 %2432 }
 0x48a   :  { %2841 = vmatprep.mubr.bf16.mxu1 %v3939_v57 }
 0x491   :  { %2842 = vmatmul.mubr.bf16.gmra.mrb[116].mxu1 %v3941_v9 }
 0x492   :  { %2849 = vmatprep.mubr.bf16.mxu1 %v3942_v22 }
 0x499   :  { %2850 = vmatmul.mubr.bf16.gmra.mrb[120].mxu1 %v3944_v24 }
 0x49a   :  { %2857 = vmatprep.mubr.bf16.mxu1 %v3945_v23 }
 0x4a1   :  { %2858 = vmatmul.mubr.bf16.gmra.mrb[124].mxu1 %v3947_v26 }
 0x4fc   :  { %v3499_v46 = vpop.f32.mrb[64].mxu1 }
 0x4fd   :  { %v3500_v33 = vpop.f32.mrb[65].mxu1 }
 0x4fe   :  { %v3501_v47 = vadd.f32 %v3500_v33, %v3499_v46  ;;  %v3502_v14 = vpop.f32.mrb[66].mxu1  ;;  %v5293_v33 = vpop.permute.xlu1 %2522 }
 0x4ff   :  { %v3503_v38 = vpop.f32.mrb[67].mxu1 }
 0x500   :  { %v2740_v18 = vadd.f32 %v3501_v47, %v2388_v28  ;;  %v3504_v4 = vadd.f32 %v3503_v38, %v3502_v14 }
 0x502   :  { %v2866_v29 = vmul.f32 0.01, %v2740_v18  ;;  %v2743_v11 = vadd.f32 %v3504_v4, %v2393_v12 }
 0x504   :  { %v2867_v15 = vmul.f32 0.01, %v2743_v11  ;;  %v3505_v61 = vpop.f32.mrb[68].mxu1  ;;  %v2898_v42 = vmax.f32 %v2740_v18, %v2866_v29 }
 0x505   :  { %v3506_v3 = vpop.f32.mrb[69].mxu1 }
 0x506   :  { %v2899_v62 = vmax.f32 %v2743_v11, %v2867_v15  ;;  %v3507_v56 = vadd.f32 %v3506_v3, %v3505_v61  ;;  %v3508_v1 = vpop.f32.mrb[70].mxu1 }
 0x507   :  { %v3509_v30 = vpop.f32.mrb[71].mxu1 }
 0x508   :  { %v5281_v41 = vpack.c.bf16 %v2899_v62, %v2898_v42  ;;  %v2748_v27 = vadd.f32 %v3507_v56, %v2398_v49  ;;  %v3510_v34 = vadd.f32 %v3509_v30, %v3508_v1  ;;  %v2443_v42 = vpop.permute.xlu1 %2442 }
 0x50a   :  { %v2868_v36 = vmul.f32 0.01, %v2748_v27  ;;  %v2751_v58 = vadd.f32 %v3510_v34, %v2403_v55  ;;  %v5291_v55 = vpop.permute.xlu0 %2517 }
 0x50c   :  { %v2869_v32 = vmul.f32 0.01, %v2751_v58  ;;  %v3511_v37 = vpop.f32.mrb[72].mxu1  ;;  %v2900_v54 = vmax.f32 %v2748_v27, %v2868_v36 }
 0x50d   :  { %v3512_v16 = vpop.f32.mrb[73].mxu1 }
 0x50e   :  { %v2901_v48 = vmax.f32 %v2751_v58, %v2869_v32  ;;  %v3513_v39 = vadd.f32 %v3512_v16, %v3511_v37  ;;  %v3514_v50 = vpop.f32.mrb[74].mxu1  ;;  %v2438_v11 = vpop.permute.xlu0 %2437 }
 0x50f   :  { %v3515_v7 = vpop.f32.mrb[75].mxu1  ;;  %v5299_v32 = vpop.permute.xlu1 %2532 }
 0x510   :  { %v5287_v43 = vpack.c.bf16 %v2901_v48, %v2900_v54  ;;  %v2756_v13 = vadd.f32 %v3513_v39, %v2408_v44  ;;  %v3516_v31 = vadd.f32 %v3515_v7, %v3514_v50 }
 0x512   :  { %v2870_v17 = vmul.f32 0.01, %v2756_v13  ;;  %v2759_v52 = vadd.f32 %v3516_v31, %v2413_v51  ;;  %v5297_v30 = vpop.permute.xlu0 %2527 }
 0x514   :  { %v2871_v45 = vmul.f32 0.01, %v2759_v52  ;;  %v3517_v53 = vpop.f32.mrb[76].mxu1  ;;  %v2902_v9 = vmax.f32 %v2756_v13, %v2870_v17  ;;  %v2453_v17 = vpop.permute.xlu1 %2452 }
 0x515   :  { %v3518_v57 = vpop.f32.mrb[77].mxu1 }
 0x516   :  { %v2903_v22 = vmax.f32 %v2759_v52, %v2871_v45  ;;  %v3519_v24 = vadd.f32 %v3518_v57, %v3517_v53  ;;  %v3520_v23 = vpop.f32.mrb[78].mxu1  ;;  %v2448_v7 = vpop.permute.xlu0 %2447 }
 0x517   :  { %v3521_v26 = vpop.f32.mrb[79].mxu1 }
 0x518   :  { %v5289_v28 = vpack.c.bf16 %v2903_v22, %v2902_v9  ;;  %v2764_v12 = vadd.f32 %v3519_v24, %v2418_v8  ;;  %v3522_v49 = vadd.f32 %v3521_v26, %v3520_v23 }
 0x51a   :  { %v2872_v44 = vmul.f32 0.01, %v2764_v12  ;;  %v2767_v46 = vadd.f32 %v3522_v49, %v2423_v59  ;;  %v5305_v23 = vpop.permute.xlu0 %2537  ;;  %v5307_v49 = vpop.permute.xlu1 %2542 }
 0x51c   :  { %v2873_v51 = vmul.f32 0.01, %v2767_v46  ;;  %v3523_v47 = vpop.f32.mrb[80].mxu1  ;;  %v2904_v38 = vmax.f32 %v2764_v12, %v2872_v44 }
 0x51d   :  { %v3524_v14 = vpop.f32.mrb[81].mxu1 }
 0x51e   :  { %v2905_v18 = vmax.f32 %v2767_v46, %v2873_v51  ;;  %v3525_v4 = vadd.f32 %v3524_v14, %v3523_v47  ;;  %v3526_v29 = vpop.f32.mrb[82].mxu1 }
 0x51f   :  { %v3527_v15 = vpop.f32.mrb[83].mxu1 }
 0x520   :  { %v5295_v61 = vpack.c.bf16 %v2905_v18, %v2904_v38  ;;  %v2772_v25 = vadd.f32 %v3525_v4, %v2428_v60  ;;  %v3528_v3 = vadd.f32 %v3527_v15, %v3526_v29  ;;  %v2458_v4 = vpop.permute.xlu0 %2457 }
 0x522   :  { %v2874_v62 = vmul.f32 0.01, %v2772_v25  ;;  %v2775_v56 = vadd.f32 %v3528_v3, %v2433_v20  ;;  %v2463_v3 = vpop.permute.xlu1 %2462 }
 0x524   :  { %v2875_v1 = vmul.f32 0.01, %v2775_v56  ;;  %v3529_v8 = vpop.f32.mrb[84].mxu1  ;;  %v2906_v34 = vmax.f32 %v2772_v25, %v2874_v62 }
 0x525   :  { %v3530_v27 = vpop.f32.mrb[85].mxu1 }
 0x526   :  { %v2907_v59 = vmax.f32 %v2775_v56, %v2875_v1  ;;  %v3531_v36 = vadd.f32 %v3530_v27, %v3529_v8  ;;  %v3532_v58 = vpop.f32.mrb[86].mxu1 }
 0x527   :  { %v3533_v37 = vpop.f32.mrb[87].mxu1 }
 0x528   :  { %v5301_v16 = vpack.c.bf16 %v2907_v59, %v2906_v34  ;;  %v2780_v54 = vadd.f32 %v3531_v36, %v2438_v11  ;;  %v3534_v48 = vadd.f32 %v3533_v37, %v3532_v58 }
 0x52a   :  { %v2876_v39 = vmul.f32 0.01, %v2780_v54  ;;  %v2783_v50 = vadd.f32 %v3534_v48, %v2443_v42 }
 0x52c   :  { %v2877_v13 = vmul.f32 0.01, %v2783_v50  ;;  %v3535_v31 = vpop.f32.mrb[88].mxu1  ;;  %v2908_v60 = vmax.f32 %v2780_v54, %v2876_v39 }
 0x52d   :  { %v3536_v52 = vpop.f32.mrb[89].mxu1 }
 0x52e   :  { %v2909_v45 = vmax.f32 %v2783_v50, %v2877_v13  ;;  %v3537_v53 = vadd.f32 %v3536_v52, %v3535_v31  ;;  %v3538_v20 = vpop.f32.mrb[90].mxu1 }
 0x52f   :  { %v3539_v57 = vpop.f32.mrb[91].mxu1 }
 0x530   :  { %v5303_v9 = vpack.c.bf16 %v2909_v45, %v2908_v60  ;;  %v2788_v22 = vadd.f32 %v3537_v53, %v2448_v7  ;;  %v3540_v24 = vadd.f32 %v3539_v57, %v3538_v20 }
 0x532   :  { %v2878_v26 = vmul.f32 0.01, %v2788_v22  ;;  %v2791_v12 = vadd.f32 %v3540_v24, %v2453_v17 }
 0x534   :  { %v2879_v44 = vmul.f32 0.01, %v2791_v12  ;;  %v3541_v46 = vpop.f32.mrb[92].mxu1  ;;  %v2910_v47 = vmax.f32 %v2788_v22, %v2878_v26 }
 0x535   :  { %v3542_v51 = vpop.f32.mrb[93].mxu1 }
 0x536   :  { %v2911_v14 = vmax.f32 %v2791_v12, %v2879_v44  ;;  %v3543_v38 = vadd.f32 %v3542_v51, %v3541_v46  ;;  %v3544_v18 = vpop.f32.mrb[94].mxu1 }
 0x537   :  { %v3545_v29 = vpop.f32.mrb[95].mxu1 }
 0x538   :  { %v5309_v11 = vpack.c.bf16 %v2911_v14, %v2910_v47  ;;  %v2796_v15 = vadd.f32 %v3543_v38, %v2458_v4  ;;  %v3546_v25 = vadd.f32 %v3545_v29, %v3544_v18 }
 0x53a   :  { %v2880_v42 = vmul.f32 0.01, %v2796_v15  ;;  %v2799_v62 = vadd.f32 %v3546_v25, %v2463_v3 }
 0x53c   :  { %v2881_v56 = vmul.f32 0.01, %v2799_v62  ;;  %v3547_v1 = vpop.f32.mrb[96].mxu1  ;;  %v2912_v27 = vmax.f32 %v2796_v15, %v2880_v42 }
 0x53d   :  { %v3548_v8 = vpop.f32.mrb[97].mxu1 }
 0x53e   :  { %v2913_v34 = vmax.f32 %v2799_v62, %v2881_v56  ;;  %v3549_v59 = vadd.f32 %v3548_v8, %v3547_v1  ;;  %v3550_v36 = vpop.f32.mrb[98].mxu1 }
 0x53f   :  { %v3551_v58 = vpop.f32.mrb[99].mxu1 }
 0x540   :  { %v5311_v37 = vpack.c.bf16 %v2913_v34, %v2912_v27  ;;  %v2804_v54 = vadd.f32 %v3549_v59, %v5262_v21  ;;  %v3552_v48 = vadd.f32 %v3551_v58, %v3550_v36 }
 0x542   :  { %v2882_v39 = vmul.f32 0.01, %v2804_v54  ;;  %v2807_v50 = vadd.f32 %v3552_v48, %v5264_v63 }
 0x544   :  { %v2883_v7 = vmul.f32 0.01, %v2807_v50  ;;  %v3553_v13 = vpop.f32.mrb[100].mxu1  ;;  %v2914_v17 = vmax.f32 %v2804_v54, %v2882_v39 }
 0x545   :  { %v3554_v31 = vpop.f32.mrb[101].mxu1 }
 0x546   :  { %v2915_v52 = vmax.f32 %v2807_v50, %v2883_v7  ;;  %v3555_v60 = vadd.f32 %v3554_v31, %v3553_v13  ;;  %v3556_v45 = vpop.f32.mrb[102].mxu1 }
 0x547   :  { %v3557_v53 = vpop.f32.mrb[103].mxu1 }
 0x548   :  { %v2812_v20 = vadd.f32 %v3555_v60, %v5266_v0  ;;  %v3558_v57 = vadd.f32 %v3557_v53, %v3556_v45  ;;  %v2938_v22 = vpack.c.bf16 %v2915_v52, %v2914_v17 }
 0x54a   :  { %v2884_v24 = vmul.f32 0.01, %v2812_v20  ;;  %v2815_v26 = vadd.f32 %v3558_v57, %v5268_v10  ;;  %3595 = vmatprep.subr.bf16.mxu0 %v2938_v22 }
 0x54b   :  { %3596 = vmatpush3.bf16.msra.mxu0 %v5281_v41 }
 0x54c   :  { %v2885_v21 = vmul.f32 0.01, %v2815_v26  ;;  %v3559_v63 = vpop.f32.mrb[104].mxu1  ;;  %v2916_v44 = vmax.f32 %v2812_v20, %v2884_v24 }
 0x54d   :  { %v3560_v12 = vpop.f32.mrb[105].mxu1 }
 0x54e   :  { %v2917_v46 = vmax.f32 %v2815_v26, %v2885_v21  ;;  %v3561_v51 = vadd.f32 %v3560_v12, %v3559_v63  ;;  %v3562_v47 = vpop.f32.mrb[106].mxu1 }
 0x54f   :  { %v3563_v14 = vpop.f32.mrb[107].mxu1 }
 0x550   :  { %v2820_v38 = vadd.f32 %v3561_v51, %v5270_v40  ;;  %v3564_v18 = vadd.f32 %v3563_v14, %v3562_v47  ;;  %v2939_v0 = vpack.c.bf16 %v2917_v46, %v2916_v44 }
 0x552   :  { %v2886_v4 = vmul.f32 0.01, %v2820_v38  ;;  %v2823_v29 = vadd.f32 %v3564_v18, %v5272_v5  ;;  %3597 = vmatprep.subr.bf16.mxu0 %v2939_v0 }
 0x553   :  { %3598 = vmatpush3.bf16.msra.mxu0 %v5287_v43 }
 0x554   :  { %v2887_v10 = vmul.f32 0.01, %v2823_v29  ;;  %v3565_v41 = vpop.f32.mrb[108].mxu1  ;;  %v2918_v25 = vmax.f32 %v2820_v38, %v2886_v4 }
 0x555   :  { %v3566_v15 = vpop.f32.mrb[109].mxu1 }
 0x556   :  { %v2919_v3 = vmax.f32 %v2823_v29, %v2887_v10  ;;  %v3567_v42 = vadd.f32 %v3566_v15, %v3565_v41  ;;  %v3568_v62 = vpop.f32.mrb[110].mxu1 }
 0x557   :  { %v3569_v56 = vpop.f32.mrb[111].mxu1 }
 0x558   :  { %v2828_v1 = vadd.f32 %v3567_v42, %v5274_v35  ;;  %v3570_v8 = vadd.f32 %v3569_v56, %v3568_v62  ;;  %v2940_v40 = vpack.c.bf16 %v2919_v3, %v2918_v25 }
 0x55a   :  { %v2888_v27 = vmul.f32 0.01, %v2828_v1  ;;  %v2831_v34 = vadd.f32 %v3570_v8, %v5276_v6  ;;  %3599 = vmatprep.subr.bf16.mxu0 %v2940_v40  ;;  %v3948_v8 = vld [vmem:[%s5358_s11] ss:$8 sps:$4 sm:$0xff]  }
 0x55b   :  { %3600 = vmatpush3.bf16.msra.mxu0 %v5289_v28 }
 0x55c   :  { %v2889_v5 = vmul.f32 0.01, %v2831_v34  ;;  %v3571_v43 = vpop.f32.mrb[112].mxu1  ;;  %v2920_v36 = vmax.f32 %v2828_v1, %v2888_v27 }
 0x55d   :  { %v3572_v59 = vpop.f32.mrb[113].mxu1 }
 0x55e   :  { %v2921_v58 = vmax.f32 %v2831_v34, %v2889_v5  ;;  %v3573_v54 = vadd.f32 %v3572_v59, %v3571_v43  ;;  %v3574_v48 = vpop.f32.mrb[114].mxu1  ;;  %v2958_v59 = vpop.permute.xlu1 %2957 }
 0x55f   :  { %v3575_v39 = vpop.f32.mrb[115].mxu1 }
 0x560   :  { %v2836_v50 = vadd.f32 %v3573_v54, %v5283_v19  ;;  %v3576_v7 = vadd.f32 %v3575_v39, %v3574_v48  ;;  %v2941_v35 = vpack.c.bf16 %v2921_v58, %v2920_v36 }
 0x562   :  { %v2890_v13 = vmul.f32 0.01, %v2836_v50  ;;  %v2839_v31 = vadd.f32 %v3576_v7, %v5285_v2  ;;  %3601 = vmatprep.subr.bf16.mxu0 %v2941_v35 }
 0x563   :  { %3602 = vmatpush3.bf16.msra.mxu0 %v5295_v61 }
 0x564   :  { %v2891_v6 = vmul.f32 0.01, %v2839_v31  ;;  %v3577_v28 = vpop.f32.mrb[116].mxu1  ;;  %v2922_v52 = vmax.f32 %v2836_v50, %v2890_v13 }
 0x565   :  { %v3578_v17 = vpop.f32.mrb[117].mxu1 }
 0x566   :  { %v2923_v60 = vmax.f32 %v2839_v31, %v2891_v6  ;;  %v3579_v45 = vadd.f32 %v3578_v17, %v3577_v28  ;;  %v3580_v53 = vpop.f32.mrb[118].mxu1 }
 0x567   :  { %v3581_v20 = vpop.f32.mrb[119].mxu1 }
 0x568   :  { %v2844_v57 = vadd.f32 %v3579_v45, %v5291_v55  ;;  %v3582_v22 = vadd.f32 %v3581_v20, %v3580_v53  ;;  %v2942_v19 = vpack.c.bf16 %v2923_v60, %v2922_v52 }
 0x56a   :  { %v2892_v24 = vmul.f32 0.01, %v2844_v57  ;;  %v2847_v26 = vadd.f32 %v3582_v22, %v5293_v33  ;;  %3603 = vmatprep.subr.bf16.mxu0 %v2942_v19 }
 0x56b   :  { %3604 = vmatpush3.bf16.msra.mxu0 %v5301_v16 }
 0x56c   :  { %v2893_v2 = vmul.f32 0.01, %v2847_v26  ;;  %v3583_v61 = vpop.f32.mrb[120].mxu1  ;;  %v2924_v63 = vmax.f32 %v2844_v57, %v2892_v24 }
 0x56d   :  { %v3584_v21 = vpop.f32.mrb[121].mxu1 }
 0x56e   :  { %v2925_v12 = vmax.f32 %v2847_v26, %v2893_v2  ;;  %v3585_v44 = vadd.f32 %v3584_v21, %v3583_v61  ;;  %v3586_v46 = vpop.f32.mrb[122].mxu1 }
 0x56f   :  { %v3587_v51 = vpop.f32.mrb[123].mxu1 }
 0x570   :  { %v2852_v47 = vadd.f32 %v3585_v44, %v5297_v30  ;;  %v3588_v14 = vadd.f32 %v3587_v51, %v3586_v46  ;;  %v2943_v55 = vpack.c.bf16 %v2925_v12, %v2924_v63 }
 0x572   :  { %v2894_v38 = vmul.f32 0.01, %v2852_v47  ;;  %v2855_v18 = vadd.f32 %v3588_v14, %v5299_v32  ;;  %3605 = vmatprep.subr.bf16.mxu0 %v2943_v55 }
 0x573   :  { %3606 = vmatpush3.bf16.msra.mxu0 %v5303_v9 }
 0x574   :  { %v2895_v33 = vmul.f32 0.01, %v2855_v18  ;;  %v3589_v16 = vpop.f32.mrb[124].mxu1  ;;  %v2926_v4 = vmax.f32 %v2852_v47, %v2894_v38 }
 0x575   :  { %v3590_v0 = vpop.f32.mrb[125].mxu1 }
 0x576   :  { %v2927_v29 = vmax.f32 %v2855_v18, %v2895_v33  ;;  %v3591_v10 = vadd.f32 %v3590_v0, %v3589_v16  ;;  %v3592_v41 = vpop.f32.mrb[126].mxu1 }
 0x577   :  { %v3593_v15 = vpop.f32.mrb[127].mxu1 }
 0x578   :  { %v2860_v25 = vadd.f32 %v3591_v10, %v5305_v23  ;;  %v3594_v3 = vadd.f32 %v3593_v15, %v3592_v41  ;;  %v2944_v30 = vpack.c.bf16 %v2927_v29, %v2926_v4 }
 0x57a   :  { %v2896_v42 = vmul.f32 0.01, %v2860_v25  ;;  %v2863_v62 = vadd.f32 %v3594_v3, %v5307_v49  ;;  %3607 = vmatprep.subr.bf16.mxu0 %v2944_v30  ;;  %v2953_v49 = vpop.permute.xlu0 %2952 }
 0x57b   :  { %3608 = vmatpush3.bf16.msra.mxu0 %v5309_v11 }
 0x57c   :  { %v2897_v32 = vmul.f32 0.01, %v2863_v62  ;;  %v2928_v9 = vmax.f32 %v2860_v25, %v2896_v42 }
 0x57e   :  { %v2929_v56 = vmax.f32 %v2863_v62, %v2897_v32 }
 0x580   :  { %v2945_v1 = vpack.c.bf16 %v2929_v56, %v2928_v9 }
 0x582   :  { %3609 = vmatprep.subr.bf16.mxu0 %v2945_v1 }
 0x583   :  { %3610 = vmatpush3.bf16.msra.mxu0 %v5311_v37 }
 0x586   :  { %3003 = vmatmul.mubr.bf16.vlgmr.msra.gmra.mrb[96].mxu0 %v3948_v8 }
 0x659   :  { %v3611_v23 = vpop.f32.mrb[96].mxu0 }
 0x65a   :  { %v3612_v40 = vpop.f32.mrb[97].mxu0 }
 0x65b   :  { %v3613_v27 = vadd.f32 %v3612_v40, %v3611_v23  ;;  %v3614_v34 = vpop.f32.mrb[98].mxu0 }
 0x65c   :  { %v3615_v5 = vpop.f32.mrb[99].mxu0 }
 0x65d   :  { %v3005_v43 = vadd.f32 %v3613_v27, %v2953_v49  ;;  %v3616_v11 = vadd.f32 %v3615_v5, %v3614_v34 }
 0x65f   :  { %v3011_v36 = vmax.f32 %v3005_v43, 0.0  ;;  %v3008_v58 = vadd.f32 %v3616_v11, %v2958_v59 }
 0x661   :  { %3013 = vst [vmem:[%s5359_s13] sm:$0xff] %v3011_v36  ;;  %v3012_v54 = vmax.f32 %v3008_v58, 0.0 }
 0x663   :  { %3014 = vst [vmem:[%s5359_s13 + $0x8] sm:$0xff] %v3012_v54 }

</bundles_post_ra>
